<compile_context>
chip_gen: v6e
topology: v6e:2x2x1
jax: 0.10.0
libtpu: 0.0.40
codegen_flags: <defaults>
</compile_context>

<pallas_src>
import jax
import jax.numpy as jnp
from jax import lax
from jax.experimental import pallas as pl
from jax.experimental.pallas import tpu as pltpu

MU = 1.0
INITIAL_PRICE = 50.0
DRIFT_SCALE = MU / 64.0            # drift = (mu * x) / 64, folded to one constant


def _linear_init(key, fan_in, fan_out):
    """PyTorch-style Linear init: U(-1/sqrt(fan_in), 1/sqrt(fan_in))."""
    kw, kb = jax.random.split(key)
    bound = 1.0 / float(fan_in) ** 0.5
    w = jax.random.uniform(kw, (fan_in, fan_out), jnp.float32, -bound, bound)
    b = jax.random.uniform(kb, (1, fan_out), jnp.float32, -bound, bound)
    return w, b


def init_generator_params(key, hidden_size, mlp_size, num_layers):
    assert num_layers >= 2, "kernel stacks (num_layers-1) hidden layers"
    keys = jax.random.split(key, num_layers + 2)
    # vol MLP: Linear(2, mlp) + LipSwish, (num_layers-1) x [Linear(mlp, mlp) + LipSwish],
    #          Linear(mlp, hidden) + Tanh;  readout Linear(hidden, 1).
    w1, b1 = _linear_init(keys[0], 2, mlp_size)
    whs, bhs = [], []
    for i in range(num_layers - 1):
        w, b = _linear_init(keys[1 + i], mlp_size, mlp_size)
        whs.append(w)
        bhs.append(b)
    wh = jnp.stack(whs, axis=0)                   # (NH, mlp, mlp)
    bh = jnp.stack(bhs, axis=0)                   # (NH, 1,   mlp)
    wo, bo = _linear_init(keys[num_layers], mlp_size, hidden_size)
    wl_, bl = _linear_init(keys[num_layers + 1], hidden_size, 1)
    wl = wl_.T                                    # (1, hidden) row for lane-wise reduce
    return dict(w1=w1, b1=b1, wh=wh, bh=bh, wo=wo, bo=bo, wl=wl, bl=bl)


def _make_kernel(batch_tile, chunk_steps, num_hidden, unroll):

    def kernel(ts_ref, dts_ref, dw_ref, w1_ref, b1_ref, wh_ref, bh_ref,
               wo_ref, bo_ref, wl_ref, bl_ref, out_ref, state_ref):
        c = pl.program_id(1)                      # time-chunk index ("arbitrary" axis)

        # Hoist loop-invariant weights into values once (they stay resident).
        w1 = w1_ref[...]                          # (2, mlp)
        b1 = b1_ref[...]                          # (1, mlp)
        whs = [wh_ref[l] for l in range(num_hidden)]
        bhs = [bh_ref[l] for l in range(num_hidden)]
        wo = wo_ref[...]                          # (mlp, hidden)
        bo = bo_ref[...]                          # (1, hidden)
        wl = wl_ref[...]                          # (1, hidden), pre-scaled by 1/8
        bl = bl_ref[...]                          # (1, 1),      pre-scaled by 1/8

        def f_and_g(t, x):
            # t: scalar ; x: (batch_tile, 1)
            # Linear(2, mlp) on cat([t, x]) expanded as two rank-1 updates.
            h = t * w1[0:1, :] + x * w1[1:2, :] + b1            # (bt, mlp)
            h = 0.909 * h * jax.nn.sigmoid(h)                   # LipSwish
            for l in range(num_hidden):
                h = jnp.dot(h, whs[l], preferred_element_type=jnp.float32) + bhs[l]
                h = 0.909 * h * jax.nn.sigmoid(h)
            h = jnp.tanh(jnp.dot(h, wo, preferred_element_type=jnp.float32) + bo)
            lin = jnp.sum(h * wl, axis=-1, keepdims=True) + bl  # Linear(hidden,1)/8
            return DRIFT_SCALE * x, lin * x                     # drift, diffusion

        @pl.when(c == 0)
        def _():
            y0 = jnp.full((batch_tile, 1), INITIAL_PRICE, jnp.float32)
            f0, g0 = f_and_g(ts_ref[0], y0)
            state_ref[:, 0:1] = y0
            state_ref[:, 1:2] = y0
            state_ref[:, 2:3] = f0
            state_ref[:, 3:4] = g0

        y = state_ref[:, 0:1]
        z = state_ref[:, 1:2]
        f = state_ref[:, 2:3]
        g = state_ref[:, 3:4]

        base = c * chunk_steps                    # first global step of this chunk

        def body(i, carry):
            y, z, f, g = carry
            dt = dts_ref[base + i]                # SMEM scalar reads
            t1 = ts_ref[base + i + 1]
            dw = dw_ref[:, pl.ds(i, 1)]           # (bt, 1) lane-dense load
            # Reversible Heun (Stratonovich), as in torchsde's `reversible_heun`:
            z1 = 2.0 * y - z + f * dt + g * dw
            f1, g1 = f_and_g(t1, z1)
            y1 = y + 0.5 * dt * (f + f1) + 0.5 * (g + g1) * dw
            out_ref[:, pl.ds(i, 1)] = y1          # narrow per-step store (vst slot idle)
            return (y1, z1, f1, g1)

        y, z, f, g = lax.fori_loop(0, chunk_steps, body, (y, z, f, g),
                                   unroll=unroll)

        # Persist the SDE state for the next time chunk.
        state_ref[:, 0:1] = y
        state_ref[:, 1:2] = z
        state_ref[:, 2:3] = f
        state_ref[:, 3:4] = g

    return kernel


def generator_forward(ts, batch_size, params, bm_key, *, batch_tile=None,
                      max_chunk_steps=512):
    """Pallas forward: returns the (B, T, 2) tensor [t, X_t] (== interp coeffs)."""
    ts = ts.astype(jnp.float32)
    T = int(ts.shape[0])
    n_steps = T - 1
    dts = ts[1:] - ts[:-1]                                         # (T-1,)
    # Brownian increments N(0, dt); noise_size == 1.
    dw = jax.random.normal(bm_key, (n_steps, batch_size), jnp.float32)
    dw = dw * jnp.sqrt(dts)[:, None]

    # ---- time chunking: bounds VMEM use independent of trajectory length ----
    assert max_chunk_steps % 128 == 0
    if n_steps <= max_chunk_steps:
        chunk_steps = n_steps                     # block == full dim (always legal)
        n_steps_pad = n_steps
    else:
        chunk_steps = max_chunk_steps             # multiple of 128
        n_steps_pad = ((n_steps + chunk_steps - 1) // chunk_steps) * chunk_steps
    num_chunks = n_steps_pad // chunk_steps
    pad = n_steps_pad - n_steps

    # Lane-dense layouts: batch on sublanes, time on lanes (matches the output).
    dw_bt = dw.T                                                   # (B, n_steps)
    ts_pad, dts_pad = ts, dts
    if pad:
        dw_bt = jnp.pad(dw_bt, ((0, 0), (0, pad)))                 # dW=0 in padding
        ts_pad = jnp.concatenate([ts, jnp.full((pad,), ts[-1], jnp.float32)])
        dts_pad = jnp.concatenate([dts, jnp.zeros((pad,), jnp.float32)])

    # ---- batch tiling: keep SDE state + activations inside the 64-vreg file, ----
    # ---- and give >=2 "parallel" tiles (v7x has 2 TCs) when batch > 64.      ----
    if batch_tile is None:
        if batch_size <= 64:
            batch_tile = batch_size               # single tile (== full dim, legal)
        else:
            batch_tile = 64
            while batch_size % batch_tile != 0 and batch_tile > 8:
                batch_tile -= 8
            if batch_size % batch_tile != 0:
                batch_tile = batch_size           # fallback: one full-dim tile
    assert batch_size % batch_tile == 0, (batch_size, batch_tile)
    n_tiles = batch_size // batch_tile

    w1, b1, wh, bh, wo, bo, wl, bl = (
        params[k] for k in ("w1", "b1", "wh", "bh", "wo", "bo", "wl", "bl"))
    num_hidden = wh.shape[0]
    # Fold the /8 of the diffusion readout into the readout weights (host side).
    wl_s = wl * 0.125
    bl_s = bl * 0.125

    unroll = True if chunk_steps <= 16 else 2
    kernel = _make_kernel(batch_tile, chunk_steps, num_hidden, unroll)

    smem = pl.BlockSpec(memory_space=pltpu.MemorySpace.SMEM)        # scalar path
    vmem_full = pl.BlockSpec(memory_space=pltpu.MemorySpace.VMEM)   # untiled invariants

    traj = pl.pallas_call(
        kernel,
        out_shape=jax.ShapeDtypeStruct((batch_size, n_steps_pad), jnp.float32),
        grid=(n_tiles, num_chunks),
        in_specs=[
            smem,                                                   # ts
            smem,                                                   # dts
            pl.BlockSpec((batch_tile, chunk_steps), lambda b, c: (b, c)),  # dW
            vmem_full, vmem_full, vmem_full, vmem_full,             # w1 b1 wh bh
            vmem_full, vmem_full, vmem_full, vmem_full,             # wo bo wl bl
        ],
        out_specs=pl.BlockSpec((batch_tile, chunk_steps), lambda b, c: (b, c)),
        scratch_shapes=[pltpu.VMEM((batch_tile, 4), jnp.float32)],  # y|z|f|g carry
        compiler_params=pltpu.CompilerParams(
            dimension_semantics=("parallel", "arbitrary")),
    )(ts_pad, dts_pad, dw_bt, w1, b1, wh, bh, wo, bo, wl_s, bl_s)

    traj = traj[:, :n_steps]                                        # drop time padding
    x0 = jnp.full((batch_size, 1), INITIAL_PRICE, jnp.float32)
    ys = jnp.concatenate([x0, traj], axis=1)[:, :, None]            # == xs.transpose(0,1)
    ts_exp = jnp.broadcast_to(ts[None, :, None], (batch_size, T, 1))
    # torchcde.linear_interpolation_coeffs is the identity on NaN-free inputs.
    return jnp.concatenate([ts_exp, ys], axis=2)                    # (B, T, 2)


def generator_forward_ref(ts, batch_size, params, bm_key):
    """Pure-JAX reference (same math, lax.scan) for correctness checking."""
    ts = ts.astype(jnp.float32)
    T = ts.shape[0]
    n_steps = T - 1
    dts = ts[1:] - ts[:-1]
    dw = jax.random.normal(bm_key, (n_steps, batch_size), jnp.float32)
    dw = (dw * jnp.sqrt(dts)[:, None])[:, :, None]                  # (n_steps, B, 1)
    w1, b1, wh, bh, wo, bo, wl, bl = (
        params[k] for k in ("w1", "b1", "wh", "bh", "wo", "bo", "wl", "bl"))

    def f_and_g(t, x):
        h = t * w1[0:1, :] + x * w1[1:2, :] + b1
        h = 0.909 * h * jax.nn.sigmoid(h)
        for l in range(wh.shape[0]):
            h = h @ wh[l] + bh[l]
            h = 0.909 * h * jax.nn.sigmoid(h)
        h = jnp.tanh(h @ wo + bo)
        lin = jnp.sum(h * wl, axis=-1, keepdims=True) + bl
        return (MU * x) / 64.0, (lin * x) / 8.0

    y0 = jnp.full((batch_size, 1), INITIAL_PRICE, jnp.float32)
    f0, g0 = f_and_g(ts[0], y0)

    def step(carry, inp):
        y, z, f, g = carry
        t0, t1, dwi = inp
        dt = t1 - t0
        z1 = 2.0 * y - z + f * dt + g * dwi
        f1, g1 = f_and_g(t1, z1)
        y1 = y + 0.5 * dt * (f + f1) + 0.5 * (g + g1) * dwi
        return (y1, z1, f1, g1), y1

    _, ys_steps = lax.scan(step, (y0, y0, f0, g0), (ts[:-1], ts[1:], dw))
    xs = jnp.concatenate([y0[None], ys_steps], axis=0)              # (T, B, 1)
    ys = jnp.transpose(xs, (1, 0, 2))
    ts_exp = jnp.broadcast_to(ts[None, :, None], (batch_size, T, 1))
    return jnp.concatenate([ts_exp, ys], axis=2)


if __name__ == "__main__":
    # Model hyperparameters (small, consistent with the module's constructor).
    data_size = 1
    initial_noise_size = 4   # stored but unused by Generator.forward
    noise_size = 1           # required: diffusion.view(B, 1, noise_size) on a (B,1) tensor
    hidden_size = 32
    mlp_size = 32
    num_layers = 2
    batch_size = 8
    T = 8

    key = jax.random.PRNGKey(0)
    pkey, bkey = jax.random.split(key)
    params = init_generator_params(pkey, hidden_size, mlp_size, num_layers)
    ts = jnp.arange(T, dtype=jnp.float32)

    out = jax.block_until_ready(generator_forward(ts, batch_size, params, bkey))
    assert out.shape == (batch_size, T, 1 + data_size), out.shape
    assert out.dtype == jnp.float32
    assert bool(jnp.all(jnp.isfinite(out)))

    ref = jax.block_until_ready(generator_forward_ref(ts, batch_size, params, bkey))
    assert bool(jnp.allclose(out, ref, rtol=2e-2, atol=2e-1)), (
        float(jnp.max(jnp.abs(out - ref))))

    # Also exercise the multi-chunk + padded-tail path (2 time chunks of 128 steps).
    T2, batch2 = 132, 16
    ts2 = jnp.arange(T2, dtype=jnp.float32)
    bkey2 = jax.random.PRNGKey(1)
    out2 = jax.block_until_ready(
        generator_forward(ts2, batch2, params, bkey2, max_chunk_steps=128))
    assert out2.shape == (batch2, T2, 2), out2.shape
    assert bool(jnp.all(jnp.isfinite(out2)))
    ref2 = jax.block_until_ready(generator_forward_ref(ts2, batch2, params, bkey2))
    assert bool(jnp.allclose(out2, ref2, rtol=5e-2, atol=1.0)), (
        float(jnp.max(jnp.abs(out2 - ref2))))

    print("KERNEL_OK")
</pallas_src>

<mosaic_0001>
module attributes {stable_mosaic.version = 11 : i64} {
  func.func @kernel(%arg0: i32, %arg1: i32, %arg2: memref<8xf32, #tpu.memory_space<smem>>, %arg3: memref<7xf32, #tpu.memory_space<smem>>, %arg4: memref<8x7xf32, #tpu.memory_space<vmem>>, %arg5: memref<2x32xf32, #tpu.memory_space<vmem>>, %arg6: memref<1x32xf32, #tpu.memory_space<vmem>>, %arg7: memref<1x32x32xf32, #tpu.memory_space<vmem>>, %arg8: memref<1x1x32xf32, #tpu.memory_space<vmem>>, %arg9: memref<32x32xf32, #tpu.memory_space<vmem>>, %arg10: memref<1x32xf32, #tpu.memory_space<vmem>>, %arg11: memref<1x32xf32, #tpu.memory_space<vmem>>, %arg12: memref<1x1xf32, #tpu.memory_space<vmem>>, %arg13: memref<8x7xf32, #tpu.memory_space<vmem>>, %arg14: memref<8x4xf32, #tpu.memory_space<vmem>>) attributes {dimension_semantics = [#tpu.dimension_semantics<parallel>, #tpu.dimension_semantics<arbitrary>], iteration_bounds = array<i64: 1, 1>, scalar_prefetch = 0 : i64, scratch_operands = 1 : i64, tpu.core_type = #tpu.core_type<tc>, window_params = [{transform_indices = @transform_0, window_bounds = array<i64: 8>}, {transform_indices = @transform_1, window_bounds = array<i64: 7>}, {transform_indices = @transform_2, window_bounds = array<i64: 8, 7>}, {pipeline_mode = #tpu.pipeline_mode<synchronous>, transform_indices = @transform_3, window_bounds = array<i64: 2, 32>}, {pipeline_mode = #tpu.pipeline_mode<synchronous>, transform_indices = @transform_4, window_bounds = array<i64: 1, 32>}, {pipeline_mode = #tpu.pipeline_mode<synchronous>, transform_indices = @transform_5, window_bounds = array<i64: 1, 32, 32>}, {pipeline_mode = #tpu.pipeline_mode<synchronous>, transform_indices = @transform_6, window_bounds = array<i64: 1, 1, 32>}, {pipeline_mode = #tpu.pipeline_mode<synchronous>, transform_indices = @transform_7, window_bounds = array<i64: 32, 32>}, {pipeline_mode = #tpu.pipeline_mode<synchronous>, transform_indices = @transform_8, window_bounds = array<i64: 1, 32>}, {pipeline_mode = #tpu.pipeline_mode<synchronous>, transform_indices = @transform_9, window_bounds = array<i64: 1, 32>}, {pipeline_mode = #tpu.pipeline_mode<synchronous>, transform_indices = @transform_10, window_bounds = array<i64: 1, 1>}, {transform_indices = @transform_11, window_bounds = array<i64: 8, 7>}]} {
    %c0 = arith.constant 0 : index
    %c0_0 = arith.constant 0 : index
    %0 = vector.load %arg5[%c0, %c0_0] : memref<2x32xf32, #tpu.memory_space<vmem>>, vector<2x32xf32>
    %c0_1 = arith.constant 0 : index
    %c0_2 = arith.constant 0 : index
    %1 = vector.load %arg6[%c0_1, %c0_2] : memref<1x32xf32, #tpu.memory_space<vmem>>, vector<1x32xf32>
    %c0_3 = arith.constant 0 : index
    %c0_4 = arith.constant 0 : index
    %c0_5 = arith.constant 0 : index
    %2 = vector.load %arg7[%c0_3, %c0_4, %c0_5] : memref<1x32x32xf32, #tpu.memory_space<vmem>>, vector<1x32x32xf32>
    %3 = vector.shape_cast %2 : vector<1x32x32xf32> to vector<32x32xf32>
    %c0_6 = arith.constant 0 : index
    %c0_7 = arith.constant 0 : index
    %c0_8 = arith.constant 0 : index
    %4 = vector.load %arg8[%c0_6, %c0_7, %c0_8] : memref<1x1x32xf32, #tpu.memory_space<vmem>>, vector<1x1x32xf32>
    %5 = vector.shape_cast %4 : vector<1x1x32xf32> to vector<1x32xf32>
    %c0_9 = arith.constant 0 : index
    %c0_10 = arith.constant 0 : index
    %6 = vector.load %arg9[%c0_9, %c0_10] : memref<32x32xf32, #tpu.memory_space<vmem>>, vector<32x32xf32>
    %c0_11 = arith.constant 0 : index
    %c0_12 = arith.constant 0 : index
    %7 = vector.load %arg10[%c0_11, %c0_12] : memref<1x32xf32, #tpu.memory_space<vmem>>, vector<1x32xf32>
    %c0_13 = arith.constant 0 : index
    %c0_14 = arith.constant 0 : index
    %8 = vector.load %arg11[%c0_13, %c0_14] : memref<1x32xf32, #tpu.memory_space<vmem>>, vector<1x32xf32>
    %c0_15 = arith.constant 0 : index
    %c0_16 = arith.constant 0 : index
    %9 = vector.load %arg12[%c0_15, %c0_16] : memref<1x1xf32, #tpu.memory_space<vmem>>, vector<1x1xf32>
    %c0_i32 = arith.constant 0 : i32
    %10 = arith.cmpi eq, %arg1, %c0_i32 : i32
    %11 = arith.extui %10 : i1 to i32
    %c0_i32_17 = arith.constant 0 : i32
    %12 = arith.cmpi ne, %11, %c0_i32_17 : i32
    scf.if %12 {
      %cst_130 = arith.constant 5.000000e+01 : f32
      %526 = vector.broadcast %cst_130 : f32 to vector<8x1xf32>
      %c0_131 = arith.constant 0 : index
      %527 = memref.load %arg2[%c0_131] : memref<8xf32, #tpu.memory_space<smem>>
      %528 = vector.extract_strided_slice %0 {offsets = [0, 0], sizes = [1, 32], strides = [1, 1]} : vector<2x32xf32> to vector<1x32xf32>
      %529 = vector.broadcast %527 : f32 to vector<1x32xf32>
      %530 = arith.mulf %529, %528 : vector<1x32xf32>
      %531 = vector.extract_strided_slice %0 {offsets = [1, 0], sizes = [1, 32], strides = [1, 1]} : vector<2x32xf32> to vector<1x32xf32>
      %532 = vector.broadcast %526 : vector<8x1xf32> to vector<8x32xf32>
      %533 = vector.broadcast %531 : vector<1x32xf32> to vector<8x32xf32>
      %534 = arith.mulf %532, %533 : vector<8x32xf32>
      %535 = vector.broadcast %530 : vector<1x32xf32> to vector<8x32xf32>
      %536 = arith.addf %535, %534 : vector<8x32xf32>
      %537 = vector.broadcast %1 : vector<1x32xf32> to vector<8x32xf32>
      %538 = arith.addf %536, %537 : vector<8x32xf32>
      %cst_132 = arith.constant 0.908999979 : f32
      %539 = vector.broadcast %cst_132 : f32 to vector<8x32xf32>
      %540 = arith.mulf %539, %538 : vector<8x32xf32>
      %541 = arith.negf %538 : vector<8x32xf32>
      %542 = math.exp %541 : vector<8x32xf32>
      %cst_133 = arith.constant 1.000000e+00 : f32
      %543 = vector.broadcast %cst_133 : f32 to vector<8x32xf32>
      %544 = arith.addf %543, %542 : vector<8x32xf32>
      %545 = arith.divf %543, %544 : vector<8x32xf32>
      %546 = arith.mulf %540, %545 : vector<8x32xf32>
      %cst_134 = arith.constant dense<0.000000e+00> : vector<8x32xf32>
      %547 = tpu.matmul %546, %3, %cst_134 {dimension_numbers = #tpu.dot_dimension_numbers<[1], [0], [0], [1], [0, 0, 1, 1], [], []>} : vector<8x32xf32>, vector<32x32xf32>, vector<8x32xf32> -> vector<8x32xf32>
      %548 = vector.broadcast %5 : vector<1x32xf32> to vector<8x32xf32>
      %549 = arith.addf %547, %548 : vector<8x32xf32>
      %cst_135 = arith.constant 0.908999979 : f32
      %550 = vector.broadcast %cst_135 : f32 to vector<8x32xf32>
      %551 = arith.mulf %550, %549 : vector<8x32xf32>
      %552 = arith.negf %549 : vector<8x32xf32>
      %553 = math.exp %552 : vector<8x32xf32>
      %cst_136 = arith.constant 1.000000e+00 : f32
      %554 = vector.broadcast %cst_136 : f32 to vector<8x32xf32>
      %555 = arith.addf %554, %553 : vector<8x32xf32>
      %556 = arith.divf %554, %555 : vector<8x32xf32>
      %557 = arith.mulf %551, %556 : vector<8x32xf32>
      %cst_137 = arith.constant dense<0.000000e+00> : vector<8x32xf32>
      %558 = tpu.matmul %557, %6, %cst_137 {dimension_numbers = #tpu.dot_dimension_numbers<[1], [0], [0], [1], [0, 0, 1, 1], [], []>} : vector<8x32xf32>, vector<32x32xf32>, vector<8x32xf32> -> vector<8x32xf32>
      %559 = vector.broadcast %7 : vector<1x32xf32> to vector<8x32xf32>
      %560 = arith.addf %558, %559 : vector<8x32xf32>
      %561 = math.tanh %560 : vector<8x32xf32>
      %562 = vector.broadcast %8 : vector<1x32xf32> to vector<8x32xf32>
      %563 = arith.mulf %561, %562 : vector<8x32xf32>
      %cst_138 = arith.constant dense<0.000000e+00> : vector<8xf32>
      %564 = vector.multi_reduction <add>, %563, %cst_138 [1] : vector<8x32xf32> to vector<8xf32>
      %565 = vector.shape_cast %564 : vector<8xf32> to vector<8x1xf32>
      %566 = vector.broadcast %9 : vector<1x1xf32> to vector<8x1xf32>
      %567 = arith.addf %565, %566 : vector<8x1xf32>
      %cst_139 = arith.constant 1.562500e-02 : f32
      %568 = vector.broadcast %cst_139 : f32 to vector<8x1xf32>
      %569 = arith.mulf %568, %526 : vector<8x1xf32>
      %570 = arith.mulf %567, %526 : vector<8x1xf32>
      %c0_140 = arith.constant 0 : index
      %c0_141 = arith.constant 0 : index
      %571 = vector.load %arg14[%c0_140, %c0_141] : memref<8x4xf32, #tpu.memory_space<vmem>>, vector<8x1xf32>
      tpu.vector_store %arg14[%c0_140, %c0_141], %526 {strides = array<i32>} : memref<8x4xf32, #tpu.memory_space<vmem>>, vector<8x1xf32>,
      %c0_142 = arith.constant 0 : index
      %c1_143 = arith.constant 1 : index
      %572 = vector.load %arg14[%c0_142, %c1_143] : memref<8x4xf32, #tpu.memory_space<vmem>>, vector<8x1xf32>
      tpu.vector_store %arg14[%c0_142, %c1_143], %526 {strides = array<i32>} : memref<8x4xf32, #tpu.memory_space<vmem>>, vector<8x1xf32>,
      %c0_144 = arith.constant 0 : index
      %c2_145 = arith.constant 2 : index
      %573 = vector.load %arg14[%c0_144, %c2_145] : memref<8x4xf32, #tpu.memory_space<vmem>>, vector<8x1xf32>
      tpu.vector_store %arg14[%c0_144, %c2_145], %569 {strides = array<i32>} : memref<8x4xf32, #tpu.memory_space<vmem>>, vector<8x1xf32>,
      %c0_146 = arith.constant 0 : index
      %c3_147 = arith.constant 3 : index
      %574 = vector.load %arg14[%c0_146, %c3_147] : memref<8x4xf32, #tpu.memory_space<vmem>>, vector<8x1xf32>
      tpu.vector_store %arg14[%c0_146, %c3_147], %570 {strides = array<i32>} : memref<8x4xf32, #tpu.memory_space<vmem>>, vector<8x1xf32>,
    } else {
    }
    %c0_18 = arith.constant 0 : index
    %c0_19 = arith.constant 0 : index
    %13 = vector.load %arg14[%c0_18, %c0_19] : memref<8x4xf32, #tpu.memory_space<vmem>>, vector<8x1xf32>
    %c0_20 = arith.constant 0 : index
    %c1 = arith.constant 1 : index
    %14 = vector.load %arg14[%c0_20, %c1] : memref<8x4xf32, #tpu.memory_space<vmem>>, vector<8x1xf32>
    %c0_21 = arith.constant 0 : index
    %c2 = arith.constant 2 : index
    %15 = vector.load %arg14[%c0_21, %c2] : memref<8x4xf32, #tpu.memory_space<vmem>>, vector<8x1xf32>
    %c0_22 = arith.constant 0 : index
    %c3 = arith.constant 3 : index
    %16 = vector.load %arg14[%c0_22, %c3] : memref<8x4xf32, #tpu.memory_space<vmem>>, vector<8x1xf32>
    %c7_i32 = arith.constant 7 : i32
    %17 = arith.muli %arg1, %c7_i32 : i32
    %c0_i32_23 = arith.constant 0 : i32
    %18 = arith.addi %17, %c0_i32_23 : i32
    %19 = arith.index_cast %18 : i32 to index
    %20 = memref.load %arg3[%19] : memref<7xf32, #tpu.memory_space<smem>>
    %21 = arith.addi %17, %c0_i32_23 : i32
    %c1_i32 = arith.constant 1 : i32
    %22 = arith.addi %21, %c1_i32 : i32
    %23 = arith.index_cast %22 : i32 to index
    %24 = memref.load %arg2[%23] : memref<8xf32, #tpu.memory_space<smem>>
    %c0_24 = arith.constant 0 : index
    %25 = arith.index_cast %c0_i32_23 : i32 to index
    %26 = vector.load %arg4[%c0_24, %25] : memref<8x7xf32, #tpu.memory_space<vmem>>, vector<8x1xf32>
    %cst = arith.constant 2.000000e+00 : f32
    %27 = vector.broadcast %cst : f32 to vector<8x1xf32>
    %28 = arith.mulf %27, %13 : vector<8x1xf32>
    %29 = arith.subf %28, %14 : vector<8x1xf32>
    %30 = vector.broadcast %20 : f32 to vector<8x1xf32>
    %31 = arith.mulf %15, %30 : vector<8x1xf32>
    %32 = arith.addf %29, %31 : vector<8x1xf32>
    %33 = arith.mulf %16, %26 : vector<8x1xf32>
    %34 = arith.addf %32, %33 : vector<8x1xf32>
    %35 = vector.extract_strided_slice %0 {offsets = [0, 0], sizes = [1, 32], strides = [1, 1]} : vector<2x32xf32> to vector<1x32xf32>
    %36 = vector.broadcast %24 : f32 to vector<1x32xf32>
    %37 = arith.mulf %36, %35 : vector<1x32xf32>
    %38 = vector.extract_strided_slice %0 {offsets = [1, 0], sizes = [1, 32], strides = [1, 1]} : vector<2x32xf32> to vector<1x32xf32>
    %39 = vector.broadcast %34 : vector<8x1xf32> to vector<8x32xf32>
    %40 = vector.broadcast %38 : vector<1x32xf32> to vector<8x32xf32>
    %41 = arith.mulf %39, %40 : vector<8x32xf32>
    %42 = vector.broadcast %37 : vector<1x32xf32> to vector<8x32xf32>
    %43 = arith.addf %42, %41 : vector<8x32xf32>
    %44 = vector.broadcast %1 : vector<1x32xf32> to vector<8x32xf32>
    %45 = arith.addf %43, %44 : vector<8x32xf32>
    %cst_25 = arith.constant 0.908999979 : f32
    %46 = vector.broadcast %cst_25 : f32 to vector<8x32xf32>
    %47 = arith.mulf %46, %45 : vector<8x32xf32>
    %48 = arith.negf %45 : vector<8x32xf32>
    %49 = math.exp %48 : vector<8x32xf32>
    %cst_26 = arith.constant 1.000000e+00 : f32
    %50 = vector.broadcast %cst_26 : f32 to vector<8x32xf32>
    %51 = arith.addf %50, %49 : vector<8x32xf32>
    %52 = arith.divf %50, %51 : vector<8x32xf32>
    %53 = arith.mulf %47, %52 : vector<8x32xf32>
    %cst_27 = arith.constant dense<0.000000e+00> : vector<8x32xf32>
    %54 = tpu.matmul %53, %3, %cst_27 {dimension_numbers = #tpu.dot_dimension_numbers<[1], [0], [0], [1], [0, 0, 1, 1], [], []>} : vector<8x32xf32>, vector<32x32xf32>, vector<8x32xf32> -> vector<8x32xf32>
    %55 = vector.broadcast %5 : vector<1x32xf32> to vector<8x32xf32>
    %56 = arith.addf %54, %55 : vector<8x32xf32>
    %cst_28 = arith.constant 0.908999979 : f32
    %57 = vector.broadcast %cst_28 : f32 to vector<8x32xf32>
    %58 = arith.mulf %57, %56 : vector<8x32xf32>
    %59 = arith.negf %56 : vector<8x32xf32>
    %60 = math.exp %59 : vector<8x32xf32>
    %cst_29 = arith.constant 1.000000e+00 : f32
    %61 = vector.broadcast %cst_29 : f32 to vector<8x32xf32>
    %62 = arith.addf %61, %60 : vector<8x32xf32>
    %63 = arith.divf %61, %62 : vector<8x32xf32>
    %64 = arith.mulf %58, %63 : vector<8x32xf32>
    %cst_30 = arith.constant dense<0.000000e+00> : vector<8x32xf32>
    %65 = tpu.matmul %64, %6, %cst_30 {dimension_numbers = #tpu.dot_dimension_numbers<[1], [0], [0], [1], [0, 0, 1, 1], [], []>} : vector<8x32xf32>, vector<32x32xf32>, vector<8x32xf32> -> vector<8x32xf32>
    %66 = vector.broadcast %7 : vector<1x32xf32> to vector<8x32xf32>
    %67 = arith.addf %65, %66 : vector<8x32xf32>
    %68 = math.tanh %67 : vector<8x32xf32>
    %69 = vector.broadcast %8 : vector<1x32xf32> to vector<8x32xf32>
    %70 = arith.mulf %68, %69 : vector<8x32xf32>
    %cst_31 = arith.constant dense<0.000000e+00> : vector<8xf32>
    %71 = vector.multi_reduction <add>, %70, %cst_31 [1] : vector<8x32xf32> to vector<8xf32>
    %72 = vector.shape_cast %71 : vector<8xf32> to vector<8x1xf32>
    %73 = vector.broadcast %9 : vector<1x1xf32> to vector<8x1xf32>
    %74 = arith.addf %72, %73 : vector<8x1xf32>
    %cst_32 = arith.constant 1.562500e-02 : f32
    %75 = vector.broadcast %cst_32 : f32 to vector<8x1xf32>
    %76 = arith.mulf %75, %34 : vector<8x1xf32>
    %77 = arith.mulf %74, %34 : vector<8x1xf32>
    %cst_33 = arith.constant 5.000000e-01 : f32
    %78 = arith.mulf %cst_33, %20 : f32
    %79 = arith.addf %15, %76 : vector<8x1xf32>
    %80 = vector.broadcast %78 : f32 to vector<8x1xf32>
    %81 = arith.mulf %80, %79 : vector<8x1xf32>
    %82 = arith.addf %13, %81 : vector<8x1xf32>
    %83 = arith.addf %16, %77 : vector<8x1xf32>
    %cst_34 = arith.constant 5.000000e-01 : f32
    %84 = vector.broadcast %cst_34 : f32 to vector<8x1xf32>
    %85 = arith.mulf %84, %83 : vector<8x1xf32>
    %86 = arith.mulf %85, %26 : vector<8x1xf32>
    %87 = arith.addf %82, %86 : vector<8x1xf32>
    %c0_35 = arith.constant 0 : index
    %88 = arith.index_cast %c0_i32_23 : i32 to index
    %89 = vector.load %arg13[%c0_35, %88] : memref<8x7xf32, #tpu.memory_space<vmem>>, vector<8x1xf32>
    tpu.vector_store %arg13[%c0_35, %88], %87 {strides = array<i32>} : memref<8x7xf32, #tpu.memory_space<vmem>>, vector<8x1xf32>,
    %c1_i32_36 = arith.constant 1 : i32
    %90 = arith.addi %17, %c1_i32_36 : i32
    %91 = arith.index_cast %90 : i32 to index
    %92 = memref.load %arg3[%91] : memref<7xf32, #tpu.memory_space<smem>>
    %93 = arith.addi %17, %c1_i32_36 : i32
    %c1_i32_37 = arith.constant 1 : i32
    %94 = arith.addi %93, %c1_i32_37 : i32
    %95 = arith.index_cast %94 : i32 to index
    %96 = memref.load %arg2[%95] : memref<8xf32, #tpu.memory_space<smem>>
    %c0_38 = arith.constant 0 : index
    %97 = arith.index_cast %c1_i32_36 : i32 to index
    %98 = vector.load %arg4[%c0_38, %97] : memref<8x7xf32, #tpu.memory_space<vmem>>, vector<8x1xf32>
    %cst_39 = arith.constant 2.000000e+00 : f32
    %99 = vector.broadcast %cst_39 : f32 to vector<8x1xf32>
    %100 = arith.mulf %99, %87 : vector<8x1xf32>
    %101 = arith.subf %100, %34 : vector<8x1xf32>
    %102 = vector.broadcast %92 : f32 to vector<8x1xf32>
    %103 = arith.mulf %76, %102 : vector<8x1xf32>
    %104 = arith.addf %101, %103 : vector<8x1xf32>
    %105 = arith.mulf %77, %98 : vector<8x1xf32>
    %106 = arith.addf %104, %105 : vector<8x1xf32>
    %107 = vector.extract_strided_slice %0 {offsets = [0, 0], sizes = [1, 32], strides = [1, 1]} : vector<2x32xf32> to vector<1x32xf32>
    %108 = vector.broadcast %96 : f32 to vector<1x32xf32>
    %109 = arith.mulf %108, %107 : vector<1x32xf32>
    %110 = vector.extract_strided_slice %0 {offsets = [1, 0], sizes = [1, 32], strides = [1, 1]} : vector<2x32xf32> to vector<1x32xf32>
    %111 = vector.broadcast %106 : vector<8x1xf32> to vector<8x32xf32>
    %112 = vector.broadcast %110 : vector<1x32xf32> to vector<8x32xf32>
    %113 = arith.mulf %111, %112 : vector<8x32xf32>
    %114 = vector.broadcast %109 : vector<1x32xf32> to vector<8x32xf32>
    %115 = arith.addf %114, %113 : vector<8x32xf32>
    %116 = vector.broadcast %1 : vector<1x32xf32> to vector<8x32xf32>
    %117 = arith.addf %115, %116 : vector<8x32xf32>
    %cst_40 = arith.constant 0.908999979 : f32
    %118 = vector.broadcast %cst_40 : f32 to vector<8x32xf32>
    %119 = arith.mulf %118, %117 : vector<8x32xf32>
    %120 = arith.negf %117 : vector<8x32xf32>
    %121 = math.exp %120 : vector<8x32xf32>
    %cst_41 = arith.constant 1.000000e+00 : f32
    %122 = vector.broadcast %cst_41 : f32 to vector<8x32xf32>
    %123 = arith.addf %122, %121 : vector<8x32xf32>
    %124 = arith.divf %122, %123 : vector<8x32xf32>
    %125 = arith.mulf %119, %124 : vector<8x32xf32>
    %cst_42 = arith.constant dense<0.000000e+00> : vector<8x32xf32>
    %126 = tpu.matmul %125, %3, %cst_42 {dimension_numbers = #tpu.dot_dimension_numbers<[1], [0], [0], [1], [0, 0, 1, 1], [], []>} : vector<8x32xf32>, vector<32x32xf32>, vector<8x32xf32> -> vector<8x32xf32>
    %127 = vector.broadcast %5 : vector<1x32xf32> to vector<8x32xf32>
    %128 = arith.addf %126, %127 : vector<8x32xf32>
    %cst_43 = arith.constant 0.908999979 : f32
    %129 = vector.broadcast %cst_43 : f32 to vector<8x32xf32>
    %130 = arith.mulf %129, %128 : vector<8x32xf32>
    %131 = arith.negf %128 : vector<8x32xf32>
    %132 = math.exp %131 : vector<8x32xf32>
    %cst_44 = arith.constant 1.000000e+00 : f32
    %133 = vector.broadcast %cst_44 : f32 to vector<8x32xf32>
    %134 = arith.addf %133, %132 : vector<8x32xf32>
    %135 = arith.divf %133, %134 : vector<8x32xf32>
    %136 = arith.mulf %130, %135 : vector<8x32xf32>
    %cst_45 = arith.constant dense<0.000000e+00> : vector<8x32xf32>
    %137 = tpu.matmul %136, %6, %cst_45 {dimension_numbers = #tpu.dot_dimension_numbers<[1], [0], [0], [1], [0, 0, 1, 1], [], []>} : vector<8x32xf32>, vector<32x32xf32>, vector<8x32xf32> -> vector<8x32xf32>
    %138 = vector.broadcast %7 : vector<1x32xf32> to vector<8x32xf32>
    %139 = arith.addf %137, %138 : vector<8x32xf32>
    %140 = math.tanh %139 : vector<8x32xf32>
    %141 = vector.broadcast %8 : vector<1x32xf32> to vector<8x32xf32>
    %142 = arith.mulf %140, %141 : vector<8x32xf32>
    %cst_46 = arith.constant dense<0.000000e+00> : vector<8xf32>
    %143 = vector.multi_reduction <add>, %142, %cst_46 [1] : vector<8x32xf32> to vector<8xf32>
    %144 = vector.shape_cast %143 : vector<8xf32> to vector<8x1xf32>
    %145 = vector.broadcast %9 : vector<1x1xf32> to vector<8x1xf32>
    %146 = arith.addf %144, %145 : vector<8x1xf32>
    %cst_47 = arith.constant 1.562500e-02 : f32
    %147 = vector.broadcast %cst_47 : f32 to vector<8x1xf32>
    %148 = arith.mulf %147, %106 : vector<8x1xf32>
    %149 = arith.mulf %146, %106 : vector<8x1xf32>
    %cst_48 = arith.constant 5.000000e-01 : f32
    %150 = arith.mulf %cst_48, %92 : f32
    %151 = arith.addf %76, %148 : vector<8x1xf32>
    %152 = vector.broadcast %150 : f32 to vector<8x1xf32>
    %153 = arith.mulf %152, %151 : vector<8x1xf32>
    %154 = arith.addf %87, %153 : vector<8x1xf32>
    %155 = arith.addf %77, %149 : vector<8x1xf32>
    %cst_49 = arith.constant 5.000000e-01 : f32
    %156 = vector.broadcast %cst_49 : f32 to vector<8x1xf32>
    %157 = arith.mulf %156, %155 : vector<8x1xf32>
    %158 = arith.mulf %157, %98 : vector<8x1xf32>
    %159 = arith.addf %154, %158 : vector<8x1xf32>
    %c0_50 = arith.constant 0 : index
    %160 = arith.index_cast %c1_i32_36 : i32 to index
    %161 = vector.load %arg13[%c0_50, %160] : memref<8x7xf32, #tpu.memory_space<vmem>>, vector<8x1xf32>
    tpu.vector_store %arg13[%c0_50, %160], %159 {strides = array<i32>} : memref<8x7xf32, #tpu.memory_space<vmem>>, vector<8x1xf32>,
    %c2_i32 = arith.constant 2 : i32
    %162 = arith.addi %17, %c2_i32 : i32
    %163 = arith.index_cast %162 : i32 to index
    %164 = memref.load %arg3[%163] : memref<7xf32, #tpu.memory_space<smem>>
    %165 = arith.addi %17, %c2_i32 : i32
    %c1_i32_51 = arith.constant 1 : i32
    %166 = arith.addi %165, %c1_i32_51 : i32
    %167 = arith.index_cast %166 : i32 to index
    %168 = memref.load %arg2[%167] : memref<8xf32, #tpu.memory_space<smem>>
    %c0_52 = arith.constant 0 : index
    %169 = arith.index_cast %c2_i32 : i32 to index
    %170 = vector.load %arg4[%c0_52, %169] : memref<8x7xf32, #tpu.memory_space<vmem>>, vector<8x1xf32>
    %cst_53 = arith.constant 2.000000e+00 : f32
    %171 = vector.broadcast %cst_53 : f32 to vector<8x1xf32>
    %172 = arith.mulf %171, %159 : vector<8x1xf32>
    %173 = arith.subf %172, %106 : vector<8x1xf32>
    %174 = vector.broadcast %164 : f32 to vector<8x1xf32>
    %175 = arith.mulf %148, %174 : vector<8x1xf32>
    %176 = arith.addf %173, %175 : vector<8x1xf32>
    %177 = arith.mulf %149, %170 : vector<8x1xf32>
    %178 = arith.addf %176, %177 : vector<8x1xf32>
    %179 = vector.extract_strided_slice %0 {offsets = [0, 0], sizes = [1, 32], strides = [1, 1]} : vector<2x32xf32> to vector<1x32xf32>
    %180 = vector.broadcast %168 : f32 to vector<1x32xf32>
    %181 = arith.mulf %180, %179 : vector<1x32xf32>
    %182 = vector.extract_strided_slice %0 {offsets = [1, 0], sizes = [1, 32], strides = [1, 1]} : vector<2x32xf32> to vector<1x32xf32>
    %183 = vector.broadcast %178 : vector<8x1xf32> to vector<8x32xf32>
    %184 = vector.broadcast %182 : vector<1x32xf32> to vector<8x32xf32>
    %185 = arith.mulf %183, %184 : vector<8x32xf32>
    %186 = vector.broadcast %181 : vector<1x32xf32> to vector<8x32xf32>
    %187 = arith.addf %186, %185 : vector<8x32xf32>
    %188 = vector.broadcast %1 : vector<1x32xf32> to vector<8x32xf32>
    %189 = arith.addf %187, %188 : vector<8x32xf32>
    %cst_54 = arith.constant 0.908999979 : f32
    %190 = vector.broadcast %cst_54 : f32 to vector<8x32xf32>
    %191 = arith.mulf %190, %189 : vector<8x32xf32>
    %192 = arith.negf %189 : vector<8x32xf32>
    %193 = math.exp %192 : vector<8x32xf32>
    %cst_55 = arith.constant 1.000000e+00 : f32
    %194 = vector.broadcast %cst_55 : f32 to vector<8x32xf32>
    %195 = arith.addf %194, %193 : vector<8x32xf32>
    %196 = arith.divf %194, %195 : vector<8x32xf32>
    %197 = arith.mulf %191, %196 : vector<8x32xf32>
    %cst_56 = arith.constant dense<0.000000e+00> : vector<8x32xf32>
    %198 = tpu.matmul %197, %3, %cst_56 {dimension_numbers = #tpu.dot_dimension_numbers<[1], [0], [0], [1], [0, 0, 1, 1], [], []>} : vector<8x32xf32>, vector<32x32xf32>, vector<8x32xf32> -> vector<8x32xf32>
    %199 = vector.broadcast %5 : vector<1x32xf32> to vector<8x32xf32>
    %200 = arith.addf %198, %199 : vector<8x32xf32>
    %cst_57 = arith.constant 0.908999979 : f32
    %201 = vector.broadcast %cst_57 : f32 to vector<8x32xf32>
    %202 = arith.mulf %201, %200 : vector<8x32xf32>
    %203 = arith.negf %200 : vector<8x32xf32>
    %204 = math.exp %203 : vector<8x32xf32>
    %cst_58 = arith.constant 1.000000e+00 : f32
    %205 = vector.broadcast %cst_58 : f32 to vector<8x32xf32>
    %206 = arith.addf %205, %204 : vector<8x32xf32>
    %207 = arith.divf %205, %206 : vector<8x32xf32>
    %208 = arith.mulf %202, %207 : vector<8x32xf32>
    %cst_59 = arith.constant dense<0.000000e+00> : vector<8x32xf32>
    %209 = tpu.matmul %208, %6, %cst_59 {dimension_numbers = #tpu.dot_dimension_numbers<[1], [0], [0], [1], [0, 0, 1, 1], [], []>} : vector<8x32xf32>, vector<32x32xf32>, vector<8x32xf32> -> vector<8x32xf32>
    %210 = vector.broadcast %7 : vector<1x32xf32> to vector<8x32xf32>
    %211 = arith.addf %209, %210 : vector<8x32xf32>
    %212 = math.tanh %211 : vector<8x32xf32>
    %213 = vector.broadcast %8 : vector<1x32xf32> to vector<8x32xf32>
    %214 = arith.mulf %212, %213 : vector<8x32xf32>
    %cst_60 = arith.constant dense<0.000000e+00> : vector<8xf32>
    %215 = vector.multi_reduction <add>, %214, %cst_60 [1] : vector<8x32xf32> to vector<8xf32>
    %216 = vector.shape_cast %215 : vector<8xf32> to vector<8x1xf32>
    %217 = vector.broadcast %9 : vector<1x1xf32> to vector<8x1xf32>
    %218 = arith.addf %216, %217 : vector<8x1xf32>
    %cst_61 = arith.constant 1.562500e-02 : f32
    %219 = vector.broadcast %cst_61 : f32 to vector<8x1xf32>
    %220 = arith.mulf %219, %178 : vector<8x1xf32>
    %221 = arith.mulf %218, %178 : vector<8x1xf32>
    %cst_62 = arith.constant 5.000000e-01 : f32
    %222 = arith.mulf %cst_62, %164 : f32
    %223 = arith.addf %148, %220 : vector<8x1xf32>
    %224 = vector.broadcast %222 : f32 to vector<8x1xf32>
    %225 = arith.mulf %224, %223 : vector<8x1xf32>
    %226 = arith.addf %159, %225 : vector<8x1xf32>
    %227 = arith.addf %149, %221 : vector<8x1xf32>
    %cst_63 = arith.constant 5.000000e-01 : f32
    %228 = vector.broadcast %cst_63 : f32 to vector<8x1xf32>
    %229 = arith.mulf %228, %227 : vector<8x1xf32>
    %230 = arith.mulf %229, %170 : vector<8x1xf32>
    %231 = arith.addf %226, %230 : vector<8x1xf32>
    %c0_64 = arith.constant 0 : index
    %232 = arith.index_cast %c2_i32 : i32 to index
    %233 = vector.load %arg13[%c0_64, %232] : memref<8x7xf32, #tpu.memory_space<vmem>>, vector<8x1xf32>
    tpu.vector_store %arg13[%c0_64, %232], %231 {strides = array<i32>} : memref<8x7xf32, #tpu.memory_space<vmem>>, vector<8x1xf32>,
    %c3_i32 = arith.constant 3 : i32
    %234 = arith.addi %17, %c3_i32 : i32
    %235 = arith.index_cast %234 : i32 to index
    %236 = memref.load %arg3[%235] : memref<7xf32, #tpu.memory_space<smem>>
    %237 = arith.addi %17, %c3_i32 : i32
    %c1_i32_65 = arith.constant 1 : i32
    %238 = arith.addi %237, %c1_i32_65 : i32
    %239 = arith.index_cast %238 : i32 to index
    %240 = memref.load %arg2[%239] : memref<8xf32, #tpu.memory_space<smem>>
    %c0_66 = arith.constant 0 : index
    %241 = arith.index_cast %c3_i32 : i32 to index
    %242 = vector.load %arg4[%c0_66, %241] : memref<8x7xf32, #tpu.memory_space<vmem>>, vector<8x1xf32>
    %cst_67 = arith.constant 2.000000e+00 : f32
    %243 = vector.broadcast %cst_67 : f32 to vector<8x1xf32>
    %244 = arith.mulf %243, %231 : vector<8x1xf32>
    %245 = arith.subf %244, %178 : vector<8x1xf32>
    %246 = vector.broadcast %236 : f32 to vector<8x1xf32>
    %247 = arith.mulf %220, %246 : vector<8x1xf32>
    %248 = arith.addf %245, %247 : vector<8x1xf32>
    %249 = arith.mulf %221, %242 : vector<8x1xf32>
    %250 = arith.addf %248, %249 : vector<8x1xf32>
    %251 = vector.extract_strided_slice %0 {offsets = [0, 0], sizes = [1, 32], strides = [1, 1]} : vector<2x32xf32> to vector<1x32xf32>
    %252 = vector.broadcast %240 : f32 to vector<1x32xf32>
    %253 = arith.mulf %252, %251 : vector<1x32xf32>
    %254 = vector.extract_strided_slice %0 {offsets = [1, 0], sizes = [1, 32], strides = [1, 1]} : vector<2x32xf32> to vector<1x32xf32>
    %255 = vector.broadcast %250 : vector<8x1xf32> to vector<8x32xf32>
    %256 = vector.broadcast %254 : vector<1x32xf32> to vector<8x32xf32>
    %257 = arith.mulf %255, %256 : vector<8x32xf32>
    %258 = vector.broadcast %253 : vector<1x32xf32> to vector<8x32xf32>
    %259 = arith.addf %258, %257 : vector<8x32xf32>
    %260 = vector.broadcast %1 : vector<1x32xf32> to vector<8x32xf32>
    %261 = arith.addf %259, %260 : vector<8x32xf32>
    %cst_68 = arith.constant 0.908999979 : f32
    %262 = vector.broadcast %cst_68 : f32 to vector<8x32xf32>
    %263 = arith.mulf %262, %261 : vector<8x32xf32>
    %264 = arith.negf %261 : vector<8x32xf32>
    %265 = math.exp %264 : vector<8x32xf32>
    %cst_69 = arith.constant 1.000000e+00 : f32
    %266 = vector.broadcast %cst_69 : f32 to vector<8x32xf32>
    %267 = arith.addf %266, %265 : vector<8x32xf32>
    %268 = arith.divf %266, %267 : vector<8x32xf32>
    %269 = arith.mulf %263, %268 : vector<8x32xf32>
    %cst_70 = arith.constant dense<0.000000e+00> : vector<8x32xf32>
    %270 = tpu.matmul %269, %3, %cst_70 {dimension_numbers = #tpu.dot_dimension_numbers<[1], [0], [0], [1], [0, 0, 1, 1], [], []>} : vector<8x32xf32>, vector<32x32xf32>, vector<8x32xf32> -> vector<8x32xf32>
    %271 = vector.broadcast %5 : vector<1x32xf32> to vector<8x32xf32>
    %272 = arith.addf %270, %271 : vector<8x32xf32>
    %cst_71 = arith.constant 0.908999979 : f32
    %273 = vector.broadcast %cst_71 : f32 to vector<8x32xf32>
    %274 = arith.mulf %273, %272 : vector<8x32xf32>
    %275 = arith.negf %272 : vector<8x32xf32>
    %276 = math.exp %275 : vector<8x32xf32>
    %cst_72 = arith.constant 1.000000e+00 : f32
    %277 = vector.broadcast %cst_72 : f32 to vector<8x32xf32>
    %278 = arith.addf %277, %276 : vector<8x32xf32>
    %279 = arith.divf %277, %278 : vector<8x32xf32>
    %280 = arith.mulf %274, %279 : vector<8x32xf32>
    %cst_73 = arith.constant dense<0.000000e+00> : vector<8x32xf32>
    %281 = tpu.matmul %280, %6, %cst_73 {dimension_numbers = #tpu.dot_dimension_numbers<[1], [0], [0], [1], [0, 0, 1, 1], [], []>} : vector<8x32xf32>, vector<32x32xf32>, vector<8x32xf32> -> vector<8x32xf32>
    %282 = vector.broadcast %7 : vector<1x32xf32> to vector<8x32xf32>
    %283 = arith.addf %281, %282 : vector<8x32xf32>
    %284 = math.tanh %283 : vector<8x32xf32>
    %285 = vector.broadcast %8 : vector<1x32xf32> to vector<8x32xf32>
    %286 = arith.mulf %284, %285 : vector<8x32xf32>
    %cst_74 = arith.constant dense<0.000000e+00> : vector<8xf32>
    %287 = vector.multi_reduction <add>, %286, %cst_74 [1] : vector<8x32xf32> to vector<8xf32>
    %288 = vector.shape_cast %287 : vector<8xf32> to vector<8x1xf32>
    %289 = vector.broadcast %9 : vector<1x1xf32> to vector<8x1xf32>
    %290 = arith.addf %288, %289 : vector<8x1xf32>
    %cst_75 = arith.constant 1.562500e-02 : f32
    %291 = vector.broadcast %cst_75 : f32 to vector<8x1xf32>
    %292 = arith.mulf %291, %250 : vector<8x1xf32>
    %293 = arith.mulf %290, %250 : vector<8x1xf32>
    %cst_76 = arith.constant 5.000000e-01 : f32
    %294 = arith.mulf %cst_76, %236 : f32
    %295 = arith.addf %220, %292 : vector<8x1xf32>
    %296 = vector.broadcast %294 : f32 to vector<8x1xf32>
    %297 = arith.mulf %296, %295 : vector<8x1xf32>
    %298 = arith.addf %231, %297 : vector<8x1xf32>
    %299 = arith.addf %221, %293 : vector<8x1xf32>
    %cst_77 = arith.constant 5.000000e-01 : f32
    %300 = vector.broadcast %cst_77 : f32 to vector<8x1xf32>
    %301 = arith.mulf %300, %299 : vector<8x1xf32>
    %302 = arith.mulf %301, %242 : vector<8x1xf32>
    %303 = arith.addf %298, %302 : vector<8x1xf32>
    %c0_78 = arith.constant 0 : index
    %304 = arith.index_cast %c3_i32 : i32 to index
    %305 = vector.load %arg13[%c0_78, %304] : memref<8x7xf32, #tpu.memory_space<vmem>>, vector<8x1xf32>
    tpu.vector_store %arg13[%c0_78, %304], %303 {strides = array<i32>} : memref<8x7xf32, #tpu.memory_space<vmem>>, vector<8x1xf32>,
    %c4_i32 = arith.constant 4 : i32
    %306 = arith.addi %17, %c4_i32 : i32
    %307 = arith.index_cast %306 : i32 to index
    %308 = memref.load %arg3[%307] : memref<7xf32, #tpu.memory_space<smem>>
    %309 = arith.addi %17, %c4_i32 : i32
    %c1_i32_79 = arith.constant 1 : i32
    %310 = arith.addi %309, %c1_i32_79 : i32
    %311 = arith.index_cast %310 : i32 to index
    %312 = memref.load %arg2[%311] : memref<8xf32, #tpu.memory_space<smem>>
    %c0_80 = arith.constant 0 : index
    %313 = arith.index_cast %c4_i32 : i32 to index
    %314 = vector.load %arg4[%c0_80, %313] : memref<8x7xf32, #tpu.memory_space<vmem>>, vector<8x1xf32>
    %cst_81 = arith.constant 2.000000e+00 : f32
    %315 = vector.broadcast %cst_81 : f32 to vector<8x1xf32>
    %316 = arith.mulf %315, %303 : vector<8x1xf32>
    %317 = arith.subf %316, %250 : vector<8x1xf32>
    %318 = vector.broadcast %308 : f32 to vector<8x1xf32>
    %319 = arith.mulf %292, %318 : vector<8x1xf32>
    %320 = arith.addf %317, %319 : vector<8x1xf32>
    %321 = arith.mulf %293, %314 : vector<8x1xf32>
    %322 = arith.addf %320, %321 : vector<8x1xf32>
    %323 = vector.extract_strided_slice %0 {offsets = [0, 0], sizes = [1, 32], strides = [1, 1]} : vector<2x32xf32> to vector<1x32xf32>
    %324 = vector.broadcast %312 : f32 to vector<1x32xf32>
    %325 = arith.mulf %324, %323 : vector<1x32xf32>
    %326 = vector.extract_strided_slice %0 {offsets = [1, 0], sizes = [1, 32], strides = [1, 1]} : vector<2x32xf32> to vector<1x32xf32>
    %327 = vector.broadcast %322 : vector<8x1xf32> to vector<8x32xf32>
    %328 = vector.broadcast %326 : vector<1x32xf32> to vector<8x32xf32>
    %329 = arith.mulf %327, %328 : vector<8x32xf32>
    %330 = vector.broadcast %325 : vector<1x32xf32> to vector<8x32xf32>
    %331 = arith.addf %330, %329 : vector<8x32xf32>
    %332 = vector.broadcast %1 : vector<1x32xf32> to vector<8x32xf32>
    %333 = arith.addf %331, %332 : vector<8x32xf32>
    %cst_82 = arith.constant 0.908999979 : f32
    %334 = vector.broadcast %cst_82 : f32 to vector<8x32xf32>
    %335 = arith.mulf %334, %333 : vector<8x32xf32>
    %336 = arith.negf %333 : vector<8x32xf32>
    %337 = math.exp %336 : vector<8x32xf32>
    %cst_83 = arith.constant 1.000000e+00 : f32
    %338 = vector.broadcast %cst_83 : f32 to vector<8x32xf32>
    %339 = arith.addf %338, %337 : vector<8x32xf32>
    %340 = arith.divf %338, %339 : vector<8x32xf32>
    %341 = arith.mulf %335, %340 : vector<8x32xf32>
    %cst_84 = arith.constant dense<0.000000e+00> : vector<8x32xf32>
    %342 = tpu.matmul %341, %3, %cst_84 {dimension_numbers = #tpu.dot_dimension_numbers<[1], [0], [0], [1], [0, 0, 1, 1], [], []>} : vector<8x32xf32>, vector<32x32xf32>, vector<8x32xf32> -> vector<8x32xf32>
    %343 = vector.broadcast %5 : vector<1x32xf32> to vector<8x32xf32>
    %344 = arith.addf %342, %343 : vector<8x32xf32>
    %cst_85 = arith.constant 0.908999979 : f32
    %345 = vector.broadcast %cst_85 : f32 to vector<8x32xf32>
    %346 = arith.mulf %345, %344 : vector<8x32xf32>
    %347 = arith.negf %344 : vector<8x32xf32>
    %348 = math.exp %347 : vector<8x32xf32>
    %cst_86 = arith.constant 1.000000e+00 : f32
    %349 = vector.broadcast %cst_86 : f32 to vector<8x32xf32>
    %350 = arith.addf %349, %348 : vector<8x32xf32>
    %351 = arith.divf %349, %350 : vector<8x32xf32>
    %352 = arith.mulf %346, %351 : vector<8x32xf32>
    %cst_87 = arith.constant dense<0.000000e+00> : vector<8x32xf32>
    %353 = tpu.matmul %352, %6, %cst_87 {dimension_numbers = #tpu.dot_dimension_numbers<[1], [0], [0], [1], [0, 0, 1, 1], [], []>} : vector<8x32xf32>, vector<32x32xf32>, vector<8x32xf32> -> vector<8x32xf32>
    %354 = vector.broadcast %7 : vector<1x32xf32> to vector<8x32xf32>
    %355 = arith.addf %353, %354 : vector<8x32xf32>
    %356 = math.tanh %355 : vector<8x32xf32>
    %357 = vector.broadcast %8 : vector<1x32xf32> to vector<8x32xf32>
    %358 = arith.mulf %356, %357 : vector<8x32xf32>
    %cst_88 = arith.constant dense<0.000000e+00> : vector<8xf32>
    %359 = vector.multi_reduction <add>, %358, %cst_88 [1] : vector<8x32xf32> to vector<8xf32>
    %360 = vector.shape_cast %359 : vector<8xf32> to vector<8x1xf32>
    %361 = vector.broadcast %9 : vector<1x1xf32> to vector<8x1xf32>
    %362 = arith.addf %360, %361 : vector<8x1xf32>
    %cst_89 = arith.constant 1.562500e-02 : f32
    %363 = vector.broadcast %cst_89 : f32 to vector<8x1xf32>
    %364 = arith.mulf %363, %322 : vector<8x1xf32>
    %365 = arith.mulf %362, %322 : vector<8x1xf32>
    %cst_90 = arith.constant 5.000000e-01 : f32
    %366 = arith.mulf %cst_90, %308 : f32
    %367 = arith.addf %292, %364 : vector<8x1xf32>
    %368 = vector.broadcast %366 : f32 to vector<8x1xf32>
    %369 = arith.mulf %368, %367 : vector<8x1xf32>
    %370 = arith.addf %303, %369 : vector<8x1xf32>
    %371 = arith.addf %293, %365 : vector<8x1xf32>
    %cst_91 = arith.constant 5.000000e-01 : f32
    %372 = vector.broadcast %cst_91 : f32 to vector<8x1xf32>
    %373 = arith.mulf %372, %371 : vector<8x1xf32>
    %374 = arith.mulf %373, %314 : vector<8x1xf32>
    %375 = arith.addf %370, %374 : vector<8x1xf32>
    %c0_92 = arith.constant 0 : index
    %376 = arith.index_cast %c4_i32 : i32 to index
    %377 = vector.load %arg13[%c0_92, %376] : memref<8x7xf32, #tpu.memory_space<vmem>>, vector<8x1xf32>
    tpu.vector_store %arg13[%c0_92, %376], %375 {strides = array<i32>} : memref<8x7xf32, #tpu.memory_space<vmem>>, vector<8x1xf32>,
    %c5_i32 = arith.constant 5 : i32
    %378 = arith.addi %17, %c5_i32 : i32
    %379 = arith.index_cast %378 : i32 to index
    %380 = memref.load %arg3[%379] : memref<7xf32, #tpu.memory_space<smem>>
    %381 = arith.addi %17, %c5_i32 : i32
    %c1_i32_93 = arith.constant 1 : i32
    %382 = arith.addi %381, %c1_i32_93 : i32
    %383 = arith.index_cast %382 : i32 to index
    %384 = memref.load %arg2[%383] : memref<8xf32, #tpu.memory_space<smem>>
    %c0_94 = arith.constant 0 : index
    %385 = arith.index_cast %c5_i32 : i32 to index
    %386 = vector.load %arg4[%c0_94, %385] : memref<8x7xf32, #tpu.memory_space<vmem>>, vector<8x1xf32>
    %cst_95 = arith.constant 2.000000e+00 : f32
    %387 = vector.broadcast %cst_95 : f32 to vector<8x1xf32>
    %388 = arith.mulf %387, %375 : vector<8x1xf32>
    %389 = arith.subf %388, %322 : vector<8x1xf32>
    %390 = vector.broadcast %380 : f32 to vector<8x1xf32>
    %391 = arith.mulf %364, %390 : vector<8x1xf32>
    %392 = arith.addf %389, %391 : vector<8x1xf32>
    %393 = arith.mulf %365, %386 : vector<8x1xf32>
    %394 = arith.addf %392, %393 : vector<8x1xf32>
    %395 = vector.extract_strided_slice %0 {offsets = [0, 0], sizes = [1, 32], strides = [1, 1]} : vector<2x32xf32> to vector<1x32xf32>
    %396 = vector.broadcast %384 : f32 to vector<1x32xf32>
    %397 = arith.mulf %396, %395 : vector<1x32xf32>
    %398 = vector.extract_strided_slice %0 {offsets = [1, 0], sizes = [1, 32], strides = [1, 1]} : vector<2x32xf32> to vector<1x32xf32>
    %399 = vector.broadcast %394 : vector<8x1xf32> to vector<8x32xf32>
    %400 = vector.broadcast %398 : vector<1x32xf32> to vector<8x32xf32>
    %401 = arith.mulf %399, %400 : vector<8x32xf32>
    %402 = vector.broadcast %397 : vector<1x32xf32> to vector<8x32xf32>
    %403 = arith.addf %402, %401 : vector<8x32xf32>
    %404 = vector.broadcast %1 : vector<1x32xf32> to vector<8x32xf32>
    %405 = arith.addf %403, %404 : vector<8x32xf32>
    %cst_96 = arith.constant 0.908999979 : f32
    %406 = vector.broadcast %cst_96 : f32 to vector<8x32xf32>
    %407 = arith.mulf %406, %405 : vector<8x32xf32>
    %408 = arith.negf %405 : vector<8x32xf32>
    %409 = math.exp %408 : vector<8x32xf32>
    %cst_97 = arith.constant 1.000000e+00 : f32
    %410 = vector.broadcast %cst_97 : f32 to vector<8x32xf32>
    %411 = arith.addf %410, %409 : vector<8x32xf32>
    %412 = arith.divf %410, %411 : vector<8x32xf32>
    %413 = arith.mulf %407, %412 : vector<8x32xf32>
    %cst_98 = arith.constant dense<0.000000e+00> : vector<8x32xf32>
    %414 = tpu.matmul %413, %3, %cst_98 {dimension_numbers = #tpu.dot_dimension_numbers<[1], [0], [0], [1], [0, 0, 1, 1], [], []>} : vector<8x32xf32>, vector<32x32xf32>, vector<8x32xf32> -> vector<8x32xf32>
    %415 = vector.broadcast %5 : vector<1x32xf32> to vector<8x32xf32>
    %416 = arith.addf %414, %415 : vector<8x32xf32>
    %cst_99 = arith.constant 0.908999979 : f32
    %417 = vector.broadcast %cst_99 : f32 to vector<8x32xf32>
    %418 = arith.mulf %417, %416 : vector<8x32xf32>
    %419 = arith.negf %416 : vector<8x32xf32>
    %420 = math.exp %419 : vector<8x32xf32>
    %cst_100 = arith.constant 1.000000e+00 : f32
    %421 = vector.broadcast %cst_100 : f32 to vector<8x32xf32>
    %422 = arith.addf %421, %420 : vector<8x32xf32>
    %423 = arith.divf %421, %422 : vector<8x32xf32>
    %424 = arith.mulf %418, %423 : vector<8x32xf32>
    %cst_101 = arith.constant dense<0.000000e+00> : vector<8x32xf32>
    %425 = tpu.matmul %424, %6, %cst_101 {dimension_numbers = #tpu.dot_dimension_numbers<[1], [0], [0], [1], [0, 0, 1, 1], [], []>} : vector<8x32xf32>, vector<32x32xf32>, vector<8x32xf32> -> vector<8x32xf32>
    %426 = vector.broadcast %7 : vector<1x32xf32> to vector<8x32xf32>
    %427 = arith.addf %425, %426 : vector<8x32xf32>
    %428 = math.tanh %427 : vector<8x32xf32>
    %429 = vector.broadcast %8 : vector<1x32xf32> to vector<8x32xf32>
    %430 = arith.mulf %428, %429 : vector<8x32xf32>
    %cst_102 = arith.constant dense<0.000000e+00> : vector<8xf32>
    %431 = vector.multi_reduction <add>, %430, %cst_102 [1] : vector<8x32xf32> to vector<8xf32>
    %432 = vector.shape_cast %431 : vector<8xf32> to vector<8x1xf32>
    %433 = vector.broadcast %9 : vector<1x1xf32> to vector<8x1xf32>
    %434 = arith.addf %432, %433 : vector<8x1xf32>
    %cst_103 = arith.constant 1.562500e-02 : f32
    %435 = vector.broadcast %cst_103 : f32 to vector<8x1xf32>
    %436 = arith.mulf %435, %394 : vector<8x1xf32>
    %437 = arith.mulf %434, %394 : vector<8x1xf32>
    %cst_104 = arith.constant 5.000000e-01 : f32
    %438 = arith.mulf %cst_104, %380 : f32
    %439 = arith.addf %364, %436 : vector<8x1xf32>
    %440 = vector.broadcast %438 : f32 to vector<8x1xf32>
    %441 = arith.mulf %440, %439 : vector<8x1xf32>
    %442 = arith.addf %375, %441 : vector<8x1xf32>
    %443 = arith.addf %365, %437 : vector<8x1xf32>
    %cst_105 = arith.constant 5.000000e-01 : f32
    %444 = vector.broadcast %cst_105 : f32 to vector<8x1xf32>
    %445 = arith.mulf %444, %443 : vector<8x1xf32>
    %446 = arith.mulf %445, %386 : vector<8x1xf32>
    %447 = arith.addf %442, %446 : vector<8x1xf32>
    %c0_106 = arith.constant 0 : index
    %448 = arith.index_cast %c5_i32 : i32 to index
    %449 = vector.load %arg13[%c0_106, %448] : memref<8x7xf32, #tpu.memory_space<vmem>>, vector<8x1xf32>
    tpu.vector_store %arg13[%c0_106, %448], %447 {strides = array<i32>} : memref<8x7xf32, #tpu.memory_space<vmem>>, vector<8x1xf32>,
    %c6_i32 = arith.constant 6 : i32
    %450 = arith.addi %17, %c6_i32 : i32
    %451 = arith.index_cast %450 : i32 to index
    %452 = memref.load %arg3[%451] : memref<7xf32, #tpu.memory_space<smem>>
    %453 = arith.addi %17, %c6_i32 : i32
    %c1_i32_107 = arith.constant 1 : i32
    %454 = arith.addi %453, %c1_i32_107 : i32
    %455 = arith.index_cast %454 : i32 to index
    %456 = memref.load %arg2[%455] : memref<8xf32, #tpu.memory_space<smem>>
    %c0_108 = arith.constant 0 : index
    %457 = arith.index_cast %c6_i32 : i32 to index
    %458 = vector.load %arg4[%c0_108, %457] : memref<8x7xf32, #tpu.memory_space<vmem>>, vector<8x1xf32>
    %cst_109 = arith.constant 2.000000e+00 : f32
    %459 = vector.broadcast %cst_109 : f32 to vector<8x1xf32>
    %460 = arith.mulf %459, %447 : vector<8x1xf32>
    %461 = arith.subf %460, %394 : vector<8x1xf32>
    %462 = vector.broadcast %452 : f32 to vector<8x1xf32>
    %463 = arith.mulf %436, %462 : vector<8x1xf32>
    %464 = arith.addf %461, %463 : vector<8x1xf32>
    %465 = arith.mulf %437, %458 : vector<8x1xf32>
    %466 = arith.addf %464, %465 : vector<8x1xf32>
    %467 = vector.extract_strided_slice %0 {offsets = [0, 0], sizes = [1, 32], strides = [1, 1]} : vector<2x32xf32> to vector<1x32xf32>
    %468 = vector.broadcast %456 : f32 to vector<1x32xf32>
    %469 = arith.mulf %468, %467 : vector<1x32xf32>
    %470 = vector.extract_strided_slice %0 {offsets = [1, 0], sizes = [1, 32], strides = [1, 1]} : vector<2x32xf32> to vector<1x32xf32>
    %471 = vector.broadcast %466 : vector<8x1xf32> to vector<8x32xf32>
    %472 = vector.broadcast %470 : vector<1x32xf32> to vector<8x32xf32>
    %473 = arith.mulf %471, %472 : vector<8x32xf32>
    %474 = vector.broadcast %469 : vector<1x32xf32> to vector<8x32xf32>
    %475 = arith.addf %474, %473 : vector<8x32xf32>
    %476 = vector.broadcast %1 : vector<1x32xf32> to vector<8x32xf32>
    %477 = arith.addf %475, %476 : vector<8x32xf32>
    %cst_110 = arith.constant 0.908999979 : f32
    %478 = vector.broadcast %cst_110 : f32 to vector<8x32xf32>
    %479 = arith.mulf %478, %477 : vector<8x32xf32>
    %480 = arith.negf %477 : vector<8x32xf32>
    %481 = math.exp %480 : vector<8x32xf32>
    %cst_111 = arith.constant 1.000000e+00 : f32
    %482 = vector.broadcast %cst_111 : f32 to vector<8x32xf32>
    %483 = arith.addf %482, %481 : vector<8x32xf32>
    %484 = arith.divf %482, %483 : vector<8x32xf32>
    %485 = arith.mulf %479, %484 : vector<8x32xf32>
    %cst_112 = arith.constant dense<0.000000e+00> : vector<8x32xf32>
    %486 = tpu.matmul %485, %3, %cst_112 {dimension_numbers = #tpu.dot_dimension_numbers<[1], [0], [0], [1], [0, 0, 1, 1], [], []>} : vector<8x32xf32>, vector<32x32xf32>, vector<8x32xf32> -> vector<8x32xf32>
    %487 = vector.broadcast %5 : vector<1x32xf32> to vector<8x32xf32>
    %488 = arith.addf %486, %487 : vector<8x32xf32>
    %cst_113 = arith.constant 0.908999979 : f32
    %489 = vector.broadcast %cst_113 : f32 to vector<8x32xf32>
    %490 = arith.mulf %489, %488 : vector<8x32xf32>
    %491 = arith.negf %488 : vector<8x32xf32>
    %492 = math.exp %491 : vector<8x32xf32>
    %cst_114 = arith.constant 1.000000e+00 : f32
    %493 = vector.broadcast %cst_114 : f32 to vector<8x32xf32>
    %494 = arith.addf %493, %492 : vector<8x32xf32>
    %495 = arith.divf %493, %494 : vector<8x32xf32>
    %496 = arith.mulf %490, %495 : vector<8x32xf32>
    %cst_115 = arith.constant dense<0.000000e+00> : vector<8x32xf32>
    %497 = tpu.matmul %496, %6, %cst_115 {dimension_numbers = #tpu.dot_dimension_numbers<[1], [0], [0], [1], [0, 0, 1, 1], [], []>} : vector<8x32xf32>, vector<32x32xf32>, vector<8x32xf32> -> vector<8x32xf32>
    %498 = vector.broadcast %7 : vector<1x32xf32> to vector<8x32xf32>
    %499 = arith.addf %497, %498 : vector<8x32xf32>
    %500 = math.tanh %499 : vector<8x32xf32>
    %501 = vector.broadcast %8 : vector<1x32xf32> to vector<8x32xf32>
    %502 = arith.mulf %500, %501 : vector<8x32xf32>
    %cst_116 = arith.constant dense<0.000000e+00> : vector<8xf32>
    %503 = vector.multi_reduction <add>, %502, %cst_116 [1] : vector<8x32xf32> to vector<8xf32>
    %504 = vector.shape_cast %503 : vector<8xf32> to vector<8x1xf32>
    %505 = vector.broadcast %9 : vector<1x1xf32> to vector<8x1xf32>
    %506 = arith.addf %504, %505 : vector<8x1xf32>
    %cst_117 = arith.constant 1.562500e-02 : f32
    %507 = vector.broadcast %cst_117 : f32 to vector<8x1xf32>
    %508 = arith.mulf %507, %466 : vector<8x1xf32>
    %509 = arith.mulf %506, %466 : vector<8x1xf32>
    %cst_118 = arith.constant 5.000000e-01 : f32
    %510 = arith.mulf %cst_118, %452 : f32
    %511 = arith.addf %436, %508 : vector<8x1xf32>
    %512 = vector.broadcast %510 : f32 to vector<8x1xf32>
    %513 = arith.mulf %512, %511 : vector<8x1xf32>
    %514 = arith.addf %447, %513 : vector<8x1xf32>
    %515 = arith.addf %437, %509 : vector<8x1xf32>
    %cst_119 = arith.constant 5.000000e-01 : f32
    %516 = vector.broadcast %cst_119 : f32 to vector<8x1xf32>
    %517 = arith.mulf %516, %515 : vector<8x1xf32>
    %518 = arith.mulf %517, %458 : vector<8x1xf32>
    %519 = arith.addf %514, %518 : vector<8x1xf32>
    %c0_120 = arith.constant 0 : index
    %520 = arith.index_cast %c6_i32 : i32 to index
    %521 = vector.load %arg13[%c0_120, %520] : memref<8x7xf32, #tpu.memory_space<vmem>>, vector<8x1xf32>
    tpu.vector_store %arg13[%c0_120, %520], %519 {strides = array<i32>} : memref<8x7xf32, #tpu.memory_space<vmem>>, vector<8x1xf32>,
    %c7_i32_121 = arith.constant 7 : i32
    %c0_122 = arith.constant 0 : index
    %c0_123 = arith.constant 0 : index
    %522 = vector.load %arg14[%c0_122, %c0_123] : memref<8x4xf32, #tpu.memory_space<vmem>>, vector<8x1xf32>
    tpu.vector_store %arg14[%c0_122, %c0_123], %519 {strides = array<i32>} : memref<8x4xf32, #tpu.memory_space<vmem>>, vector<8x1xf32>,
    %c0_124 = arith.constant 0 : index
    %c1_125 = arith.constant 1 : index
    %523 = vector.load %arg14[%c0_124, %c1_125] : memref<8x4xf32, #tpu.memory_space<vmem>>, vector<8x1xf32>
    tpu.vector_store %arg14[%c0_124, %c1_125], %466 {strides = array<i32>} : memref<8x4xf32, #tpu.memory_space<vmem>>, vector<8x1xf32>,
    %c0_126 = arith.constant 0 : index
    %c2_127 = arith.constant 2 : index
    %524 = vector.load %arg14[%c0_126, %c2_127] : memref<8x4xf32, #tpu.memory_space<vmem>>, vector<8x1xf32>
    tpu.vector_store %arg14[%c0_126, %c2_127], %508 {strides = array<i32>} : memref<8x4xf32, #tpu.memory_space<vmem>>, vector<8x1xf32>,
    %c0_128 = arith.constant 0 : index
    %c3_129 = arith.constant 3 : index
    %525 = vector.load %arg14[%c0_128, %c3_129] : memref<8x4xf32, #tpu.memory_space<vmem>>, vector<8x1xf32>
    tpu.vector_store %arg14[%c0_128, %c3_129], %509 {strides = array<i32>} : memref<8x4xf32, #tpu.memory_space<vmem>>, vector<8x1xf32>,
    return
  }
  func.func @transform_0(%arg0: i32, %arg1: i32) -> i32 {
    %c0_i32 = arith.constant 0 : i32
    %c0_i32_0 = arith.constant 0 : i32
    return %c0_i32 : i32
  }
  func.func @transform_1(%arg0: i32, %arg1: i32) -> i32 {
    %c0_i32 = arith.constant 0 : i32
    %c0_i32_0 = arith.constant 0 : i32
    return %c0_i32 : i32
  }
  func.func @transform_2(%arg0: i32, %arg1: i32) -> (i32, i32) {
    %c0_i32 = arith.constant 0 : i32
    return %arg0, %arg1 : i32, i32
  }
  func.func @transform_3(%arg0: i32, %arg1: i32) -> (i32, i32) {
    %c0_i32 = arith.constant 0 : i32
    %c0_i32_0 = arith.constant 0 : i32
    %c0_i32_1 = arith.constant 0 : i32
    return %c0_i32, %c0_i32_0 : i32, i32
  }
  func.func @transform_4(%arg0: i32, %arg1: i32) -> (i32, i32) {
    %c0_i32 = arith.constant 0 : i32
    %c0_i32_0 = arith.constant 0 : i32
    %c0_i32_1 = arith.constant 0 : i32
    return %c0_i32, %c0_i32_0 : i32, i32
  }
  func.func @transform_5(%arg0: i32, %arg1: i32) -> (i32, i32, i32) {
    %c0_i32 = arith.constant 0 : i32
    %c0_i32_0 = arith.constant 0 : i32
    %c0_i32_1 = arith.constant 0 : i32
    %c0_i32_2 = arith.constant 0 : i32
    return %c0_i32, %c0_i32_0, %c0_i32_1 : i32, i32, i32
  }
  func.func @transform_6(%arg0: i32, %arg1: i32) -> (i32, i32, i32) {
    %c0_i32 = arith.constant 0 : i32
    %c0_i32_0 = arith.constant 0 : i32
    %c0_i32_1 = arith.constant 0 : i32
    %c0_i32_2 = arith.constant 0 : i32
    return %c0_i32, %c0_i32_0, %c0_i32_1 : i32, i32, i32
  }
  func.func @transform_7(%arg0: i32, %arg1: i32) -> (i32, i32) {
    %c0_i32 = arith.constant 0 : i32
    %c0_i32_0 = arith.constant 0 : i32
    %c0_i32_1 = arith.constant 0 : i32
    return %c0_i32, %c0_i32_0 : i32, i32
  }
  func.func @transform_8(%arg0: i32, %arg1: i32) -> (i32, i32) {
    %c0_i32 = arith.constant 0 : i32
    %c0_i32_0 = arith.constant 0 : i32
    %c0_i32_1 = arith.constant 0 : i32
    return %c0_i32, %c0_i32_0 : i32, i32
  }
  func.func @transform_9(%arg0: i32, %arg1: i32) -> (i32, i32) {
    %c0_i32 = arith.constant 0 : i32
    %c0_i32_0 = arith.constant 0 : i32
    %c0_i32_1 = arith.constant 0 : i32
    return %c0_i32, %c0_i32_0 : i32, i32
  }
  func.func @transform_10(%arg0: i32, %arg1: i32) -> (i32, i32) {
    %c0_i32 = arith.constant 0 : i32
    %c0_i32_0 = arith.constant 0 : i32
    %c0_i32_1 = arith.constant 0 : i32
    return %c0_i32, %c0_i32_0 : i32, i32
  }
  func.func @transform_11(%arg0: i32, %arg1: i32) -> (i32, i32) {
    %c0_i32 = arith.constant 0 : i32
    return %arg0, %arg1 : i32, i32
  }
}

</mosaic_0001>

<bundles_post_ra>
// kernel: tpu_custom_call.1
= control target key start
LH: loop header
LB: loop body
LE: loop exit
PB: predicated region body
PF: predicated region fallthrough
CT: control target
= control target key end

     0   :  { %s3121_s0 = inlined_call_operand.vmem [shape: f32[8], index: 0, kind: input, shape index: {}]   ;;  %s3122_s1 = inlined_call_operand.hbm [shape: f32[7], index: 1, kind: input, shape index: {}]   ;;  %s3123_s2 = inlined_call_operand.hbm [shape: f32[8,7], index: 2, kind: input, shape index: {}]   ;;  %s3124_s3 = inlined_call_operand.vmem [shape: f32[2,32], index: 3, kind: input, shape index: {}]   ;;  %s3125_s4 = inlined_call_operand.vmem [shape: f32[1,32], index: 4, kind: input, shape index: {}]   ;;  %s3126_s5 = inlined_call_operand.hbm [shape: f32[1,32,32], index: 5, kind: input, shape index: {}]   ;;  %s3127_s6 = inlined_call_operand.vmem [shape: f32[1,1,32], index: 6, kind: input, shape index: {}]   ;;  %s3128_s7 = inlined_call_operand.hbm [shape: f32[32,32], index: 7, kind: input, shape index: {}]   ;;  %s3129_s8 = inlined_call_operand.vmem [shape: f32[1,32], index: 8, kind: input, shape index: {}]   ;;  %s3130_s9 = inlined_call_operand.vmem [shape: f32[1,32], index: 9, kind: input, shape index: {}]   ;;  %s3131_s10 = inlined_call_operand.<no memory space> [shape: f32[1,1], index: 10, kind: input, shape index: {}]   ;;  %s3132_s11 = inlined_call_operand.hbm [shape: f32[8,7], index: 11, kind: output, shape index: {}]  }
   0x1   :  { %v16_v0 = vstv %s3131_s10 }
   0x2   :  { %17 = vst [vmem:[#allocation3] sm:$0x1] %v16_v0 }
   0x3   :  { %18 = vsyncpa [#allocation8], 0 }
   0x4   :  { %19 = vsyncpa [#allocation7], 0 }
   0x5   :  { %20 = vsyncpa [#allocation5], 0 }
   0x6   :  { %21 = vsyncpa [#allocation12], 0 }
   0x7   :  { %22 = vsyncpa [#allocation6], 0  ;;  %s2476_s19 = smov [#allocation11]   ;;  %s29_s23 = sshll.u32 %s3121_s0, 4  ;;  %s30_s23 = int_to_ptr.vmem [resolvable:$true] %s29_s23 }
   0x8   :  { %s60_s20 = sshll.u32 %s2476_s19, 4  ;;  %s61_s20 = int_to_ptr.vmem [resolvable:$true] %s60_s20 }
   0x9   :  { %s2374_s24 = scalar_lea.vmem %s61_s20, 512  ;;  %p2379_p1 = scmp.lt.s32.totalorder %s61_s20, %s61_s20 }
   0xa   :  { %p2375_p0 = scmp.ne.s32.totalorder %s61_s20, %s2374_s24  ;;  %p2380_p2 = scmp.lt.s32.totalorder %s2374_s24, %s2374_s24 }
   0xc   :  { %p2381_p3 = por %p2380_p2, %p2379_p1 }
   0xe   :  { %p2382_p4 = pnand %p2381_p3, %p2375_p0 }
  0x10   :  { %2385 = shalt.err (!%p2382_p4)
}
  0x11   :  { %s2477_s10 = smov 128   ;;  %s2478_s25 = smov 8  }
  0x12   :  { %66 = dma.hbm_to_vmem [thread:$0]  %s3126_s5, 512, %s61_s20, [#allocation12], %s2477_s10, %s2477_s10, %s2478_s25  }
  0x13   :  { %s2386_s28 = scalar_lea.vmem %s30_s23, 16  ;;  %p2391_p6 = scmp.lt.s32.totalorder %s30_s23, %s30_s23 }
  0x14   :  { %p2387_p5 = scmp.ne.s32.totalorder %s30_s23, %s2386_s28  ;;  %p2392_p7 = scmp.lt.s32.totalorder %s2386_s28, %s2386_s28 }
  0x16   :  { %p2393_p8 = por %p2392_p7, %p2391_p6 }
  0x18   :  { %p2394_p9 = pnand %p2393_p8, %p2387_p5 }
  0x1a   :  { %2397 = shalt.err (!%p2394_p9)
}
  0x1b   :  { %s2479_s0 = smov [#allocation4]   ;;  %s2480_s29 = smov [#allocation9]  }
  0x1c   :  { %32 = dma.vmem_to_smem %s30_s23, 16, %s2479_s0, [#allocation8]  }
  0x1d   :  { %40 = dma.hbm_to_smem %s3122_s1, 16, %s2480_s29, [#allocation7]  }
  0x1e   :  { %s2481_s13 = smov [#allocation10]   ;;  %s2482_s15 = smov [#allocation13]  }
  0x1f   :  { %s47_s14 = sshll.u32 %s2481_s13, 4  ;;  %s74_s5 = sshll.u32 %s2482_s15, 4  ;;  %s48_s14 = int_to_ptr.vmem [resolvable:$true] %s47_s14  ;;  %s75_s5 = int_to_ptr.vmem [resolvable:$true] %s74_s5 }
  0x20   :  { %s2414_s16 = scalar_lea.vmem %s48_s14, 128  ;;  %p2419_p11 = scmp.lt.s32.totalorder %s48_s14, %s48_s14 }
  0x21   :  { %p2415_p10 = scmp.ne.s32.totalorder %s48_s14, %s2414_s16  ;;  %p2420_p12 = scmp.lt.s32.totalorder %s2414_s16, %s2414_s16 }
  0x23   :  { %p2421_p13 = por %p2420_p12, %p2419_p11 }
  0x25   :  { %p2422_p0 = pnand %p2421_p13, %p2415_p10 }
  0x27   :  { %2425 = shalt.err (!%p2422_p0)
}
  0x28   :  { %50 = dma.hbm_to_vmem [thread:$0]  %s3123_s2, 128, %s48_s14, [#allocation5]  }
  0x29   :  { %s2434_s19 = scalar_lea.vmem %s75_s5, 512  ;;  %p2439_p2 = scmp.lt.s32.totalorder %s75_s5, %s75_s5 }
  0x2a   :  { %p2435_p1 = scmp.ne.s32.totalorder %s75_s5, %s2434_s19  ;;  %p2440_p3 = scmp.lt.s32.totalorder %s2434_s19, %s2434_s19 }
  0x2c   :  { %p2441_p4 = por %p2440_p3, %p2439_p2 }
  0x2e   :  { %p2442_p5 = pnand %p2441_p4, %p2435_p1 }
  0x30   :  { %2445 = shalt.err (!%p2442_p5)
}
  0x31   :  { %80 = dma.hbm_to_vmem [thread:$0]  %s3128_s7, 512, %s75_s5, [#allocation12], %s2477_s10, %s2477_s10, %s2478_s25  }
  0x32   :  { %2466 = dma.done.wait [#allocation8], 16  }
  0x33   :  { %2467 = vsyncadd [#allocation8], 4294967280 }
  0x34   :  { %2468 = dma.done.wait [#allocation7], 16  }
  0x35   :  { %2469 = vsyncadd [#allocation7], 4294967280 }
  0x36   :  { %2470 = dma.done.wait [#allocation5], 128  }
  0x37   :  { %2471 = vsyncadd [#allocation5], 4294967168 }
  0x38   :  { %2472 = dma.done.wait [#allocation12], 1024  }
  0x39   :  { %2473 = vsyncadd [#allocation12], 4294966272 }
  0x3a   :  { %102 = sfence }
  0x3b   :  { %v2585_v1 = vld [vmem:[#allocation11 + $0x18] sm:$0xff]  ;;  %v124_v2 = vlaneseq  ;;  %v2483_v3 = vmov 0.0   ;;  %v2588_v4 = vld [vmem:[#allocation11 + $0x10] sm:$0xff]  ;;  %vm2484_vm0 = vmmov 0   ;;  %s121_s2 = sld [smem:[#allocation4]]  ;;  %v2595_v6 = vld [vmem:[#allocation11 + $0x8] sm:$0xff] }
  0x3c   :  { %2069 = vmatprep.subr.mxu0 %v2483_v3  ;;  %2077 = vmatprep.mubr.msk.f32.mxu0 %vm2484_vm0, %v2483_v3  ;;  %v2600_v7 = vld [vmem:[%s3124_s3] sm:$0x3]  ;;  %v2606_v9 = vld [vmem:[#allocation11] sm:$0xff]  ;;  %vm155_vm1 = vcmask 261120   ;;  %v2637_v25 = vld [vmem:[#allocation13 + $0x18] sm:$0xff]  ;;  %vm335_vm2 = vcmask 7168  }
  0x3d   :  { %2070 = vmatpush3.msra.mxu0 %v2585_v1  ;;  %v125_v5 = vshrl.u32 %v124_v2, 7  ;;  %2080 = vmatprep.subr.mxu1 %v2483_v3  ;;  %v2623_v16 = vld [vmem:[%s3125_s4] ss:$0 sm:$0xff]  ;;  %v2641_v26 = vld [vmem:[#allocation13 + $0x10] sm:$0xff]  ;;  %v2649_v28 = vld [vmem:[#allocation13] sm:$0xff]  ;;  %vm337_vm3 = vcmask 15368  }
  0x3e   :  { %2071 = vmatprep.subr.mxu0 %v2483_v3  ;;  %2088 = vmatprep.mubr.msk.f32.mxu1 %vm2484_vm0, %v2483_v3  ;;  %v2645_v27 = vld [vmem:[#allocation13 + $0x8] sm:$0xff]  ;;  %v2683_v47 = vld [vmem:[#allocation10] sm:$0xff]  ;;  %vm339_vm4 = vcmask 23568   ;;  %s2485_s0 = smov 3   ;;  %v2486_v48 = vmov 50.0   ;;  %v2487_v49 = vmov 0.78125  }
  0x3f   :  { %2072 = vmatpush3.msra.mxu0 %v2588_v4  ;;  %v126_v8 = vsub.s32 1, %v125_v5  ;;  %v2613_v11 = vsub.s32 0, %v125_v5  ;;  %2081 = vmatpush3.msra.mxu1 %v2637_v25  ;;  %v2656_v29 = vld [vmem:[%s3127_s6] ss:$0 sm:$0xff]  ;;  %336 = vst.msk [vmem:[#allocation2] sm:$0xff] %vm335_vm2, %v2486_v48  ;;  %vm345_vm5 = vcmask 31768  }
  0x40   :  { %2073 = vmatprep.subr.mxu0 %v2483_v3  ;;  %2082 = vmatprep.subr.mxu1 %v2483_v3  ;;  %v2673_v39 = vld [vmem:[%s3129_s8] ss:$0 sm:$0xff]  ;;  %338 = vst.msk [vmem:[#allocation2] sm:$0xff] %vm337_vm3, %v2486_v48  ;;  %v2690_v50 = vld [vmem:[#allocation3] ss:$0 sm:$0xff]  ;;  %s2694_s29 = sld [smem:[#allocation9]] }
  0x41   :  { %2074 = vmatpush3.msra.mxu0 %v2595_v6  ;;  %v2610_v10 = vrot.slane %v2600_v7, %v126_v8  ;;  %v122_v12 = vstv %s121_s2  ;;  %2083 = vmatpush3.msra.mxu1 %v2641_v26  ;;  %v2679_v43 = vld [vmem:[%s3130_s9] ss:$0 sm:$0xff]  ;;  %340 = vst.msk [vmem:[#allocation2] sm:$0xff] %vm339_vm4, %v2487_v49  ;;  %v2488_v55 = vmov 0   ;;  %s2489_s30 = smov 127   ;;  %s2490_s12 = smov 126  }
  0x42   :  { %2075 = vmatprep.subr.mxu0 %v2483_v3  ;;  %v123_v13 = vmul.f32 %v122_v12, %v2600_v7  ;;  %2084 = vmatprep.subr.mxu1 %v2483_v3  ;;  %s2491_s13 = smov 125   ;;  %s2492_s14 = smov 2   ;;  %vm1476_vm6 = vcmask 39968   ;;  %vm1690_vm7 = vcmask 48168   ;;  %vm1904_vm8 = vcmask 56368  }
  0x43   :  { %2076 = vmatpush3.msra.mxu0 %v2606_v9  ;;  %v128_v14 = vmul.f32 50.0, %v2610_v10  ;;  %2085 = vmatpush3.msra.mxu1 %v2645_v27  ;;  %s1943_s15 = sld [smem:[#allocation4 + $0x1]]  ;;  %s2493_s21 = smov 124  }
  0x44   :  { %2091 = vmatprep.subr.mxu0 %v2483_v3  ;;  %v132_v15 = vrot.slane %v123_v13, %v2613_v11  ;;  %2086 = vmatprep.subr.mxu1 %v2483_v3  ;;  %s2764_s16 = sld [smem:[#allocation9 + $0x1]]  ;;  %s2494_s10 = smov 123  }
  0x45   :  { %2087 = vmatpush3.msra.mxu1 %v2649_v28  ;;  %367 = vrot.lane.b32.xlu1 %v2683_v47, %s2485_s0  ;;  %s1949_s17 = sld [smem:[#allocation4 + $0x2]] }
  0x46   :  { %v133_v17 = vadd.f32 %v132_v15, %v128_v14  ;;  %2102 = vmatprep.subr.mxu1 %v2483_v3  ;;  %2270 = vset.pattern.permute.xlu1 %v2488_v55  ;;  %v359_v57 = vstv %s2694_s29  ;;  %s595_s5 = smul.f32 0.5, %s2694_s29  ;;  %s2824_s19 = sld [smem:[#allocation9 + $0x2]] }
  0x47   :  { %2271 = vset.pattern.permute.xlu0 %v2488_v55  ;;  %s1955_s1 = sld [smem:[#allocation4 + $0x3]] }
  0x48   :  { %v140_v18 = vadd.f32 %v2623_v16, %v133_v17  ;;  %s2883_s2 = sld [smem:[#allocation9 + $0x3]] }
  0x49   :  { %v376_v13 = vstv %s1943_s15  ;;  %s1961_s7 = sld [smem:[#allocation4 + $0x4]] }
  0x4a   :  { %v1939_v19 = vmul.f32 -1.442695, %v140_v18  ;;  %v141_v22 = vmul.f32 0.909, %v140_v18  ;;  %v377_v14 = vmul.f32 %v376_v13, %v2600_v7  ;;  %s821_s18 = smul.f32 0.5, %s2764_s16  ;;  %s2943_s23 = sld [smem:[#allocation9 + $0x4]] }
  0x4b   :  { %s1967_s24 = sld [smem:[#allocation4 + $0x5]] }
  0x4c   :  { %2272 = vpow2.f32 %v1939_v19  ;;  %v391_v15 = vrot.slane %v377_v14, %v2613_v11  ;;  %v628_v14 = vstv %s2764_s16  ;;  %s1035_s20 = smul.f32 0.5, %s2824_s19  ;;  %s3003_s26 = sld [smem:[#allocation9 + $0x5]] }
  0x4d   :  { %s1973_s27 = sld [smem:[#allocation4 + $0x6]] }
  0x4e   :  { %s1249_s22 = smul.f32 0.5, %s2883_s2  ;;  %s3069_s15 = sld [smem:[#allocation9 + $0x6]] }
  0x4f   :  { %s1979_s16 = sld [smem:[#allocation4 + $0x7]] }
  0x50   :  { %s1463_s25 = smul.f32 0.5, %s2943_s23 }
  0x59   :  { %v2273_v20 = vpop.eup %2272 }
  0x5a   :  { %v145_v21 = vadd.f32 1.0, %v2273_v20 }
  0x5c   :  { %2274 = vrcp.f32 %v145_v21 }
  0x69   :  { %v2275_v23 = vpop.eup %2274 }
  0x6a   :  { %v148_v24 = vmul.f32 %v2275_v23, %v141_v22 }
  0x6c   :  { %2078 = vmatmul.mubr.msk.f32.vlgmr.msra.gmra.mxu0 %vm155_vm1, %v148_v24 }
  0x6d   :  { %2092 = vmatpush3.msra.mxu0 %v2585_v1  ;;  %2099 = vmatprep.mubr.msk.f32.mxu0 %vm2484_vm0, %v2483_v3 }
  0x6e   :  { %2093 = vmatprep.subr.mxu0 %v2483_v3 }
  0x6f   :  { %2094 = vmatpush3.msra.mxu0 %v2588_v4 }
  0x70   :  { %2095 = vmatprep.subr.mxu0 %v2483_v3 }
  0x71   :  { %2096 = vmatpush3.msra.mxu0 %v2595_v6 }
  0x72   :  { %2097 = vmatprep.subr.mxu0 %v2483_v3 }
  0x73   :  { %2098 = vmatpush3.msra.mxu0 %v2606_v9 }
  0x74   :  { %2113 = vmatprep.subr.mxu0 %v2483_v3 }
  0xb7   :  { %v2703_v59 = vpop.permute.xlu1 %367 }
 0x12c   :  { %v225_v30 = vpop.f32.mrf.mxu0 }
 0x12d   :  { %v226_v31 = vadd.f32 %v2656_v29, %v225_v30 }
 0x12e   :  { %v2079_v32 = vpop.f32.mrf.mxu0 }
 0x12f   :  { %v1941_v33 = vmul.f32 -1.442695, %v226_v31  ;;  %v229_v36 = vmul.f32 0.909, %v226_v31 }
 0x131   :  { %2276 = vpow2.f32 %v1941_v33 }
 0x13e   :  { %v2277_v34 = vpop.eup %2276 }
 0x13f   :  { %v233_v35 = vadd.f32 1.0, %v2277_v34 }
 0x141   :  { %2278 = vrcp.f32 %v233_v35 }
 0x14e   :  { %v2279_v37 = vpop.eup %2278 }
 0x14f   :  { %v236_v38 = vmul.f32 %v2279_v37, %v229_v36 }
 0x151   :  { %2089 = vmatmul.mubr.msk.f32.vlgmr.msra.gmra.mxu1 %vm155_vm1, %v236_v38 }
 0x152   :  { %2103 = vmatpush3.msra.mxu1 %v2637_v25  ;;  %2110 = vmatprep.mubr.msk.f32.mxu1 %vm2484_vm0, %v2483_v3 }
 0x153   :  { %2104 = vmatprep.subr.mxu1 %v2483_v3 }
 0x154   :  { %2105 = vmatpush3.msra.mxu1 %v2641_v26 }
 0x155   :  { %2106 = vmatprep.subr.mxu1 %v2483_v3 }
 0x156   :  { %2107 = vmatpush3.msra.mxu1 %v2645_v27 }
 0x157   :  { %2108 = vmatprep.subr.mxu1 %v2483_v3 }
 0x158   :  { %2109 = vmatpush3.msra.mxu1 %v2649_v28 }
 0x159   :  { %2124 = vmatprep.subr.mxu1 %v2483_v3 }
 0x211   :  { %v312_v40 = vpop.f32.mrf.mxu1 }
 0x212   :  { %v313_v41 = vadd.f32 %v2673_v39, %v312_v40 }
 0x213   :  { %v2090_v42 = vpop.f32.mrf.mxu1 }
 0x214   :  { %2280 = vtanh.f32 %v313_v41 }
 0x221   :  { %v2281_v44 = vpop.eup %2280 }
 0x222   :  { %v323_v45 = vmul.f32 %v2281_v44, %v2679_v43 }
 0x224   :  { %v324_v46 = vsel %vm155_vm1, %v323_v45, 0.0 }
 0x225   :  { %325 = vadd.xlane.f32.xlu0 %v324_v46 }
 0x2ae   :  { %v326_v51 = vpop.xlane.xlu0 %325 }
 0x2af   :  { %v333_v52 = vadd.f32 %v2690_v50, %v326_v51 }
 0x2b1   :  { %v334_v53 = vmul.f32 50.0, %v333_v52 }
 0x2b3   :  { %342 = vrot.lane.b32.xlu0 %v334_v53, %s2485_s0 }
 0x325   :  { %v343_v54 = vpop.permute.xlu0 %342 }
 0x326   :  { %346 = vst.msk [vmem:[#allocation2] sm:$0xff] %vm345_vm5, %v343_v54 }
 0x32d   :  { %v2697_v56 = vld [vmem:[#allocation2] sm:$0xff] }
 0x32e   :  { %355 = vrot.lane.b32.xlu1 %v2697_v56, %s2489_s30  ;;  %v360_v58 = vmul.f32 %v359_v57, %v2697_v56  ;;  %v370_v60 = vmul.f32 %v2703_v59, %v2697_v56  ;;  %v353_v62 = vmul.f32 2.0, %v2697_v56  ;;  %v601_v57 = vstv %s595_s5  ;;  %s2497_s5 = smov 5  }
 0x332   :  { %362 = vrot.lane.b32.xlu1 %v360_v58, %s2490_s12 }
 0x336   :  { %372 = vrot.lane.b32.xlu1 %v370_v60, %s2491_s13 }
 0x3a0   :  { %v356_v61 = vpop.permute.xlu1 %355 }
 0x3a1   :  { %v358_v0 = vsub.f32 %v353_v62, %v356_v61 }
 0x3a4   :  { %v363_v63 = vpop.permute.xlu1 %362 }
 0x3a5   :  { %v365_v2 = vadd.f32 %v363_v63, %v358_v0 }
 0x3a8   :  { %v373_v5 = vpop.permute.xlu1 %372 }
 0x3a9   :  { %v2710_v8 = vadd.f32 %v373_v5, %v365_v2 }
 0x3ab   :  { %380 = vperm.xlu1 %2270, %v2710_v8   ;;  %v2714_v12 = vmul.f32 0.015625, %v2710_v8 }
 0x3ad   :  { %597 = vrot.lane.b32.xlu0 %v2714_v12, %s2492_s14 }
 0x41f   :  { %v598_v51 = vpop.permute.xlu0 %597 }
 0x420   :  { %v600_v54 = vadd.f32 %v598_v51, %v2697_v56 }
 0x422   :  { %v602_v58 = vmul.f32 %v601_v57, %v600_v54 }
 0x426   :  { %v381_v17 = vpop.permute.xlu1 %380 }
 0x427   :  { %v387_v18 = vmul.f32 %v381_v17, %v2610_v10 }
 0x429   :  { %v392_v19 = vadd.f32 %v391_v15, %v387_v18  ;;  %v629_v18 = vmul.f32 %v628_v14, %v2714_v12 }
 0x42b   :  { %v399_v20 = vadd.f32 %v2623_v16, %v392_v19 }
 0x42d   :  { %v1944_v21 = vmul.f32 -1.442695, %v399_v20  ;;  %v400_v24 = vmul.f32 0.909, %v399_v20 }
 0x42f   :  { %2282 = vpow2.f32 %v1944_v21  ;;  %v637_v21 = vstv %s1949_s17 }
 0x43c   :  { %v2283_v22 = vpop.eup %2282 }
 0x43d   :  { %v404_v23 = vadd.f32 1.0, %v2283_v22  ;;  %v638_v22 = vmul.f32 %v637_v21, %v2600_v7 }
 0x43f   :  { %2284 = vrcp.f32 %v404_v23  ;;  %v648_v23 = vrot.slane %v638_v22, %v2613_v11 }
 0x44c   :  { %v2285_v30 = vpop.eup %2284 }
 0x44d   :  { %v407_v31 = vmul.f32 %v2285_v30, %v400_v24 }
 0x44f   :  { %2100 = vmatmul.mubr.msk.f32.vlgmr.msra.gmra.mxu0 %vm155_vm1, %v407_v31 }
 0x450   :  { %2114 = vmatpush3.msra.mxu0 %v2585_v1  ;;  %2121 = vmatprep.mubr.msk.f32.mxu0 %vm2484_vm0, %v2483_v3 }
 0x451   :  { %2115 = vmatprep.subr.mxu0 %v2483_v3 }
 0x452   :  { %2116 = vmatpush3.msra.mxu0 %v2588_v4 }
 0x453   :  { %2117 = vmatprep.subr.mxu0 %v2483_v3 }
 0x454   :  { %2118 = vmatpush3.msra.mxu0 %v2595_v6 }
 0x455   :  { %2119 = vmatprep.subr.mxu0 %v2483_v3 }
 0x456   :  { %2120 = vmatpush3.msra.mxu0 %v2606_v9 }
 0x457   :  { %2135 = vmatprep.subr.mxu0 %v2483_v3 }
 0x50f   :  { %v484_v32 = vpop.f32.mrf.mxu0 }
 0x510   :  { %v485_v33 = vadd.f32 %v2656_v29, %v484_v32 }
 0x511   :  { %v2101_v34 = vpop.f32.mrf.mxu0 }
 0x512   :  { %v1946_v35 = vmul.f32 -1.442695, %v485_v33  ;;  %v488_v38 = vmul.f32 0.909, %v485_v33 }
 0x514   :  { %2286 = vpow2.f32 %v1946_v35 }
 0x521   :  { %v2287_v36 = vpop.eup %2286 }
 0x522   :  { %v492_v37 = vadd.f32 1.0, %v2287_v36 }
 0x524   :  { %2288 = vrcp.f32 %v492_v37 }
 0x531   :  { %v2289_v40 = vpop.eup %2288 }
 0x532   :  { %v495_v41 = vmul.f32 %v2289_v40, %v488_v38 }
 0x534   :  { %2111 = vmatmul.mubr.msk.f32.vlgmr.msra.gmra.mxu1 %vm155_vm1, %v495_v41 }
 0x535   :  { %2125 = vmatpush3.msra.mxu1 %v2637_v25  ;;  %2132 = vmatprep.mubr.msk.f32.mxu1 %vm2484_vm0, %v2483_v3 }
 0x536   :  { %2126 = vmatprep.subr.mxu1 %v2483_v3 }
 0x537   :  { %2127 = vmatpush3.msra.mxu1 %v2641_v26 }
 0x538   :  { %2128 = vmatprep.subr.mxu1 %v2483_v3 }
 0x539   :  { %2129 = vmatpush3.msra.mxu1 %v2645_v27 }
 0x53a   :  { %2130 = vmatprep.subr.mxu1 %v2483_v3 }
 0x53b   :  { %2131 = vmatpush3.msra.mxu1 %v2649_v28 }
 0x53c   :  { %2146 = vmatprep.subr.mxu1 %v2483_v3 }
 0x5f4   :  { %v571_v42 = vpop.f32.mrf.mxu1 }
 0x5f5   :  { %v572_v44 = vadd.f32 %v2673_v39, %v571_v42 }
 0x5f6   :  { %v2112_v45 = vpop.f32.mrf.mxu1 }
 0x5f7   :  { %2290 = vtanh.f32 %v572_v44 }
 0x604   :  { %v2291_v46 = vpop.eup %2290 }
 0x605   :  { %v582_v48 = vmul.f32 %v2291_v46, %v2679_v43 }
 0x607   :  { %v583_v49 = vsel %vm155_vm1, %v582_v48, 0.0 }
 0x608   :  { %584 = vadd.xlane.f32.xlu1 %v583_v49 }
 0x619   :  { %846 = vrot.lane.b32.xlu1 %v2683_v47, %s2490_s12 }
 0x691   :  { %v585_v52 = vpop.xlane.xlu1 %584 }
 0x692   :  { %v592_v53 = vadd.f32 %v2690_v50, %v585_v52 }
 0x694   :  { %v2754_v55 = vmul.f32 %v592_v53, %v2710_v8 }
 0x695   :  { %v2834_v21 = vpop.permute.xlu1 %846 }
 0x696   :  { %609 = vrot.lane.b32.xlu0 %v2754_v55, %s2485_s0 }
 0x69a   :  { %604 = vrot.lane.b32.xlu0 %v602_v58, %s2490_s12 }
 0x708   :  { %v610_v60 = vpop.permute.xlu0 %609 }
 0x709   :  { %v612_v61 = vadd.f32 %v610_v60, %v2697_v56 }
 0x70b   :  { %v613_v62 = vmul.f32 0.5, %v612_v61 }
 0x70c   :  { %v605_v0 = vpop.permute.xlu0 %604 }
 0x70d   :  { %v614_v63 = vmul.f32 %v613_v62, %v2703_v59  ;;  %v607_v2 = vadd.f32 %v605_v0, %v2697_v56  ;;  %v823_v0 = vstv %s821_s18 }
 0x70f   :  { %616 = vrot.lane.b32.xlu0 %v614_v63, %s2491_s13 }
 0x713   :  { %632 = vrot.lane.b32.xlu0 %v2683_v47, %s2489_s30 }
 0x781   :  { %v617_v5 = vpop.permute.xlu0 %616 }
 0x782   :  { %v2767_v13 = vadd.f32 %v617_v5, %v607_v2 }
 0x784   :  { %v626_v15 = vmul.f32 2.0, %v2767_v13  ;;  %621 = vst.msk [vmem:[#allocation14] sm:$0xff] %vm335_vm2, %v2767_v13 }
 0x785   :  { %v2773_v59 = vpop.permute.xlu0 %632 }
 0x786   :  { %v627_v17 = vsub.f32 %v626_v15, %v2710_v8  ;;  %v635_v20 = vmul.f32 %v2773_v59, %v2754_v55 }
 0x788   :  { %v630_v19 = vadd.f32 %v629_v18, %v627_v17 }
 0x78a   :  { %v2779_v56 = vadd.f32 %v635_v20, %v630_v19 }
 0x78c   :  { %641 = vperm.xlu0 %2271, %v2779_v56   ;;  %v2815_v60 = vmul.f32 0.015625, %v2779_v56 }
 0x78e   :  { %v822_v62 = vadd.f32 %v2815_v60, %v2714_v12  ;;  %v842_v12 = vstv %s2824_s19 }
 0x78f   :  { %v843_v22 = vmul.f32 %v842_v12, %v2815_v60 }
 0x790   :  { %v824_v5 = vmul.f32 %v823_v0, %v822_v62 }
 0x792   :  { %v825_v17 = vadd.f32 %v824_v5, %v2767_v13  ;;  %v851_v13 = vstv %s1955_s1 }
 0x807   :  { %v642_v24 = vpop.permute.xlu0 %641 }
 0x808   :  { %v644_v30 = vmul.f32 %v642_v24, %v2610_v10 }
 0x80a   :  { %v649_v8 = vadd.f32 %v648_v23, %v644_v30 }
 0x80c   :  { %v650_v31 = vadd.f32 %v2623_v16, %v649_v8 }
 0x80e   :  { %v1950_v32 = vmul.f32 -1.442695, %v650_v31  ;;  %v651_v35 = vmul.f32 0.909, %v650_v31 }
 0x810   :  { %2292 = vpow2.f32 %v1950_v32 }
 0x81d   :  { %v2293_v33 = vpop.eup %2292 }
 0x81e   :  { %v655_v34 = vadd.f32 1.0, %v2293_v33 }
 0x820   :  { %2294 = vrcp.f32 %v655_v34 }
 0x82d   :  { %v2295_v36 = vpop.eup %2294 }
 0x82e   :  { %v658_v37 = vmul.f32 %v2295_v36, %v651_v35 }
 0x830   :  { %2122 = vmatmul.mubr.msk.f32.vlgmr.msra.gmra.mxu0 %vm155_vm1, %v658_v37 }
 0x831   :  { %2136 = vmatpush3.msra.mxu0 %v2585_v1  ;;  %2143 = vmatprep.mubr.msk.f32.mxu0 %vm2484_vm0, %v2483_v3 }
 0x832   :  { %2137 = vmatprep.subr.mxu0 %v2483_v3 }
 0x833   :  { %2138 = vmatpush3.msra.mxu0 %v2588_v4 }
 0x834   :  { %2139 = vmatprep.subr.mxu0 %v2483_v3 }
 0x835   :  { %2140 = vmatpush3.msra.mxu0 %v2595_v6 }
 0x836   :  { %2141 = vmatprep.subr.mxu0 %v2483_v3 }
 0x837   :  { %2142 = vmatpush3.msra.mxu0 %v2606_v9 }
 0x838   :  { %2157 = vmatprep.subr.mxu0 %v2483_v3 }
 0x8f0   :  { %v728_v38 = vpop.f32.mrf.mxu0 }
 0x8f1   :  { %v729_v40 = vadd.f32 %v2656_v29, %v728_v38 }
 0x8f2   :  { %v2123_v41 = vpop.f32.mrf.mxu0 }
 0x8f3   :  { %v1952_v42 = vmul.f32 -1.442695, %v729_v40  ;;  %v732_v46 = vmul.f32 0.909, %v729_v40 }
 0x8f5   :  { %2296 = vpow2.f32 %v1952_v42 }
 0x902   :  { %v2297_v44 = vpop.eup %2296 }
 0x903   :  { %v736_v45 = vadd.f32 1.0, %v2297_v44 }
 0x905   :  { %2298 = vrcp.f32 %v736_v45 }
 0x912   :  { %v2299_v48 = vpop.eup %2298 }
 0x913   :  { %v739_v49 = vmul.f32 %v2299_v48, %v732_v46 }
 0x915   :  { %2133 = vmatmul.mubr.msk.f32.vlgmr.msra.gmra.mxu1 %vm155_vm1, %v739_v49 }
 0x916   :  { %2147 = vmatpush3.msra.mxu1 %v2637_v25  ;;  %2154 = vmatprep.mubr.msk.f32.mxu1 %vm2484_vm0, %v2483_v3 }
 0x917   :  { %2148 = vmatprep.subr.mxu1 %v2483_v3 }
 0x918   :  { %2149 = vmatpush3.msra.mxu1 %v2641_v26 }
 0x919   :  { %2150 = vmatprep.subr.mxu1 %v2483_v3 }
 0x91a   :  { %2151 = vmatpush3.msra.mxu1 %v2645_v27 }
 0x91b   :  { %2152 = vmatprep.subr.mxu1 %v2483_v3 }
 0x91c   :  { %2153 = vmatpush3.msra.mxu1 %v2649_v28 }
 0x91d   :  { %2168 = vmatprep.subr.mxu1 %v2483_v3 }
 0x9d5   :  { %v809_v51 = vpop.f32.mrf.mxu1 }
 0x9d6   :  { %v810_v52 = vadd.f32 %v2673_v39, %v809_v51 }
 0x9d7   :  { %v2134_v53 = vpop.f32.mrf.mxu1 }
 0x9d8   :  { %2300 = vtanh.f32 %v810_v52 }
 0x9e5   :  { %v2301_v54 = vpop.eup %2300 }
 0x9e6   :  { %v814_v57 = vmul.f32 %v2301_v54, %v2679_v43 }
 0x9e8   :  { %v815_v58 = vsel %vm155_vm1, %v814_v57, 0.0 }
 0x9e9   :  { %816 = vadd.xlane.f32.xlu0 %v815_v58 }
 0x9ff   :  { %1060 = vrot.lane.b32.xlu0 %v2683_v47, %s2491_s13  ;;  %s1677_s13 = smul.f32 0.5, %s3003_s26 }
 0xa72   :  { %v817_v61 = vpop.xlane.xlu0 %816 }
 0xa73   :  { %v818_v63 = vadd.f32 %v2690_v50, %v817_v61 }
 0xa75   :  { %v2822_v2 = vmul.f32 %v818_v63, %v2779_v56 }
 0xa77   :  { %v826_v14 = vadd.f32 %v2822_v2, %v2754_v55  ;;  %v849_v55 = vmul.f32 %v2834_v21, %v2822_v2 }
 0xa79   :  { %v827_v15 = vmul.f32 0.5, %v826_v14 }
 0xa7b   :  { %v828_v18 = vmul.f32 %v827_v15, %v2773_v59  ;;  %v852_v59 = vmul.f32 %v851_v13, %v2600_v7  ;;  %v1037_v15 = vstv %s1035_s20  ;;  %v2893_v13 = vpop.permute.xlu0 %1060 }
 0xa7d   :  { %v2830_v19 = vadd.f32 %v828_v18, %v825_v17  ;;  %v862_v8 = vrot.slane %v852_v59, %v2613_v11 }
 0xa7f   :  { %v840_v20 = vmul.f32 2.0, %v2830_v19 }
 0xa81   :  { %v841_v23 = vsub.f32 %v840_v20, %v2779_v56 }
 0xa83   :  { %v844_v24 = vadd.f32 %v843_v22, %v841_v23 }
 0xa85   :  { %v2840_v30 = vadd.f32 %v849_v55, %v844_v24 }
 0xa87   :  { %855 = vperm.xlu1 %2270, %v2840_v30   ;;  %v2874_v63 = vmul.f32 0.015625, %v2840_v30 }
 0xa89   :  { %v1036_v5 = vadd.f32 %v2874_v63, %v2815_v60  ;;  %v1056_v60 = vstv %s2883_s2  ;;  %s2498_s2 = smov 4  }
 0xa8a   :  { %v1057_v59 = vmul.f32 %v1056_v60, %v2874_v63 }
 0xa8b   :  { %v1038_v18 = vmul.f32 %v1037_v15, %v1036_v5 }
 0xa8d   :  { %v1039_v22 = vadd.f32 %v1038_v18, %v2830_v19 }
 0xb02   :  { %v856_v31 = vpop.permute.xlu1 %855 }
 0xb03   :  { %v858_v32 = vmul.f32 %v856_v31, %v2610_v10 }
 0xb05   :  { %v863_v33 = vadd.f32 %v862_v8, %v858_v32 }
 0xb07   :  { %v864_v56 = vadd.f32 %v2623_v16, %v863_v33 }
 0xb09   :  { %v1956_v34 = vmul.f32 -1.442695, %v864_v56  ;;  %v865_v37 = vmul.f32 0.909, %v864_v56 }
 0xb0b   :  { %2302 = vpow2.f32 %v1956_v34 }
 0xb18   :  { %v2303_v35 = vpop.eup %2302 }
 0xb19   :  { %v869_v36 = vadd.f32 1.0, %v2303_v35 }
 0xb1b   :  { %2304 = vrcp.f32 %v869_v36 }
 0xb28   :  { %v2305_v38 = vpop.eup %2304 }
 0xb29   :  { %v872_v40 = vmul.f32 %v2305_v38, %v865_v37 }
 0xb2b   :  { %2144 = vmatmul.mubr.msk.f32.vlgmr.msra.gmra.mxu0 %vm155_vm1, %v872_v40 }
 0xb2c   :  { %2158 = vmatpush3.msra.mxu0 %v2585_v1  ;;  %2165 = vmatprep.mubr.msk.f32.mxu0 %vm2484_vm0, %v2483_v3 }
 0xb2d   :  { %2159 = vmatprep.subr.mxu0 %v2483_v3 }
 0xb2e   :  { %2160 = vmatpush3.msra.mxu0 %v2588_v4 }
 0xb2f   :  { %2161 = vmatprep.subr.mxu0 %v2483_v3 }
 0xb30   :  { %2162 = vmatpush3.msra.mxu0 %v2595_v6 }
 0xb31   :  { %2163 = vmatprep.subr.mxu0 %v2483_v3 }
 0xb32   :  { %2164 = vmatpush3.msra.mxu0 %v2606_v9 }
 0xb33   :  { %2179 = vmatprep.subr.mxu0 %v2483_v3 }
 0xbeb   :  { %v942_v41 = vpop.f32.mrf.mxu0 }
 0xbec   :  { %v943_v42 = vadd.f32 %v2656_v29, %v942_v41 }
 0xbed   :  { %v2145_v44 = vpop.f32.mrf.mxu0 }
 0xbee   :  { %v1958_v45 = vmul.f32 -1.442695, %v943_v42  ;;  %v946_v49 = vmul.f32 0.909, %v943_v42 }
 0xbf0   :  { %2306 = vpow2.f32 %v1958_v45 }
 0xbfd   :  { %v2307_v46 = vpop.eup %2306 }
 0xbfe   :  { %v950_v48 = vadd.f32 1.0, %v2307_v46 }
 0xc00   :  { %2308 = vrcp.f32 %v950_v48 }
 0xc0d   :  { %v2309_v51 = vpop.eup %2308 }
 0xc0e   :  { %v953_v52 = vmul.f32 %v2309_v51, %v946_v49 }
 0xc10   :  { %2155 = vmatmul.mubr.msk.f32.vlgmr.msra.gmra.mxu1 %vm155_vm1, %v953_v52 }
 0xc11   :  { %2169 = vmatpush3.msra.mxu1 %v2637_v25  ;;  %2176 = vmatprep.mubr.msk.f32.mxu1 %vm2484_vm0, %v2483_v3 }
 0xc12   :  { %2170 = vmatprep.subr.mxu1 %v2483_v3 }
 0xc13   :  { %2171 = vmatpush3.msra.mxu1 %v2641_v26 }
 0xc14   :  { %2172 = vmatprep.subr.mxu1 %v2483_v3 }
 0xc15   :  { %2173 = vmatpush3.msra.mxu1 %v2645_v27 }
 0xc16   :  { %2174 = vmatprep.subr.mxu1 %v2483_v3 }
 0xc17   :  { %2175 = vmatpush3.msra.mxu1 %v2649_v28 }
 0xc18   :  { %2190 = vmatprep.subr.mxu1 %v2483_v3 }
 0xcd0   :  { %v1023_v53 = vpop.f32.mrf.mxu1 }
 0xcd1   :  { %v1024_v54 = vadd.f32 %v2673_v39, %v1023_v53 }
 0xcd2   :  { %v2156_v57 = vpop.f32.mrf.mxu1 }
 0xcd3   :  { %2310 = vtanh.f32 %v1024_v54 }
 0xce0   :  { %v2311_v58 = vpop.eup %2310 }
 0xce1   :  { %v1028_v61 = vmul.f32 %v2311_v58, %v2679_v43 }
 0xce3   :  { %v1029_v62 = vsel %vm155_vm1, %v1028_v61, 0.0 }
 0xce4   :  { %1030 = vadd.xlane.f32.xlu1 %v1029_v62 }
 0xcf5   :  { %1274 = vrot.lane.b32.xlu1 %v2683_v47, %s2493_s21 }
 0xd6d   :  { %v1031_v0 = vpop.xlane.xlu1 %1030 }
 0xd6e   :  { %v1032_v14 = vadd.f32 %v2690_v50, %v1031_v0 }
 0xd70   :  { %v2881_v17 = vmul.f32 %v1032_v14, %v2840_v30 }
 0xd72   :  { %v1040_v12 = vadd.f32 %v2881_v17, %v2822_v2  ;;  %v1063_v2 = vmul.f32 %v2893_v13, %v2881_v17 }
 0xd74   :  { %v1041_v20 = vmul.f32 0.5, %v1040_v12 }
 0xd76   :  { %v1042_v23 = vmul.f32 %v1041_v20, %v2834_v21  ;;  %v1065_v21 = vstv %s1961_s7  ;;  %s1891_s7 = smul.f32 0.5, %s3069_s15 }
 0xd77   :  { %v1066_v33 = vmul.f32 %v1065_v21, %v2600_v7 }
 0xd78   :  { %v2889_v24 = vadd.f32 %v1042_v23, %v1039_v22  ;;  %v1251_v22 = vstv %s1249_s22 }
 0xd79   :  { %v1076_v56 = vrot.slane %v1066_v33, %v2613_v11  ;;  %v2953_v33 = vpop.permute.xlu1 %1274 }
 0xd7a   :  { %v1054_v55 = vmul.f32 2.0, %v2889_v24 }
 0xd7c   :  { %v1055_v8 = vsub.f32 %v1054_v55, %v2840_v30 }
 0xd7e   :  { %v1058_v31 = vadd.f32 %v1057_v59, %v1055_v8 }
 0xd80   :  { %v2899_v32 = vadd.f32 %v1063_v2, %v1058_v31 }
 0xd82   :  { %1069 = vperm.xlu0 %2271, %v2899_v32   ;;  %v2934_v15 = vmul.f32 0.015625, %v2899_v32 }
 0xd84   :  { %v1250_v12 = vadd.f32 %v2934_v15, %v2874_v63  ;;  %v1270_v63 = vstv %s2943_s23 }
 0xd86   :  { %v1252_v60 = vmul.f32 %v1251_v22, %v1250_v12 }
 0xd88   :  { %v1253_v8 = vadd.f32 %v1252_v60, %v2889_v24 }
 0xdfd   :  { %v1070_v34 = vpop.permute.xlu0 %1069 }
 0xdfe   :  { %v1072_v35 = vmul.f32 %v1070_v34, %v2610_v10 }
 0xe00   :  { %v1077_v36 = vadd.f32 %v1076_v56, %v1072_v35  ;;  %v1271_v56 = vmul.f32 %v1270_v63, %v2934_v15 }
 0xe02   :  { %v1078_v30 = vadd.f32 %v2623_v16, %v1077_v36 }
 0xe04   :  { %v1962_v37 = vmul.f32 -1.442695, %v1078_v30  ;;  %v1079_v41 = vmul.f32 0.909, %v1078_v30 }
 0xe06   :  { %2312 = vpow2.f32 %v1962_v37 }
 0xe13   :  { %v2313_v38 = vpop.eup %2312 }
 0xe14   :  { %v1083_v40 = vadd.f32 1.0, %v2313_v38 }
 0xe16   :  { %2314 = vrcp.f32 %v1083_v40 }
 0xe23   :  { %v2315_v42 = vpop.eup %2314 }
 0xe24   :  { %v1086_v44 = vmul.f32 %v2315_v42, %v1079_v41 }
 0xe26   :  { %2166 = vmatmul.mubr.msk.f32.vlgmr.msra.gmra.mxu0 %vm155_vm1, %v1086_v44 }
 0xe27   :  { %2180 = vmatpush3.msra.mxu0 %v2585_v1  ;;  %2187 = vmatprep.mubr.msk.f32.mxu0 %vm2484_vm0, %v2483_v3 }
 0xe28   :  { %2181 = vmatprep.subr.mxu0 %v2483_v3 }
 0xe29   :  { %2182 = vmatpush3.msra.mxu0 %v2588_v4 }
 0xe2a   :  { %2183 = vmatprep.subr.mxu0 %v2483_v3 }
 0xe2b   :  { %2184 = vmatpush3.msra.mxu0 %v2595_v6 }
 0xe2c   :  { %2185 = vmatprep.subr.mxu0 %v2483_v3 }
 0xe2d   :  { %2186 = vmatpush3.msra.mxu0 %v2606_v9 }
 0xe2e   :  { %2201 = vmatprep.subr.mxu0 %v2483_v3 }
 0xee6   :  { %v1156_v45 = vpop.f32.mrf.mxu0 }
 0xee7   :  { %v1157_v46 = vadd.f32 %v2656_v29, %v1156_v45 }
 0xee8   :  { %v2167_v48 = vpop.f32.mrf.mxu0 }
 0xee9   :  { %v1964_v49 = vmul.f32 -1.442695, %v1157_v46  ;;  %v1160_v53 = vmul.f32 0.909, %v1157_v46 }
 0xeeb   :  { %2316 = vpow2.f32 %v1964_v49 }
 0xef8   :  { %v2317_v51 = vpop.eup %2316 }
 0xef9   :  { %v1164_v52 = vadd.f32 1.0, %v2317_v51 }
 0xefb   :  { %2318 = vrcp.f32 %v1164_v52 }
 0xf08   :  { %v2319_v54 = vpop.eup %2318 }
 0xf09   :  { %v1167_v57 = vmul.f32 %v2319_v54, %v1160_v53 }
 0xf0b   :  { %2177 = vmatmul.mubr.msk.f32.vlgmr.msra.gmra.mxu1 %vm155_vm1, %v1167_v57 }
 0xf0c   :  { %2191 = vmatpush3.msra.mxu1 %v2637_v25  ;;  %2198 = vmatprep.mubr.msk.f32.mxu1 %vm2484_vm0, %v2483_v3 }
 0xf0d   :  { %2192 = vmatprep.subr.mxu1 %v2483_v3 }
 0xf0e   :  { %2193 = vmatpush3.msra.mxu1 %v2641_v26 }
 0xf0f   :  { %2194 = vmatprep.subr.mxu1 %v2483_v3 }
 0xf10   :  { %2195 = vmatpush3.msra.mxu1 %v2645_v27 }
 0xf11   :  { %2196 = vmatprep.subr.mxu1 %v2483_v3 }
 0xf12   :  { %2197 = vmatpush3.msra.mxu1 %v2649_v28 }
 0xf13   :  { %2212 = vmatprep.subr.mxu1 %v2483_v3 }
 0xfcb   :  { %v1237_v58 = vpop.f32.mrf.mxu1 }
 0xfcc   :  { %v1238_v61 = vadd.f32 %v2673_v39, %v1237_v58 }
 0xfcd   :  { %v2178_v62 = vpop.f32.mrf.mxu1 }
 0xfce   :  { %2320 = vtanh.f32 %v1238_v61 }
 0xfdb   :  { %v2321_v0 = vpop.eup %2320 }
 0xfdc   :  { %v1242_v5 = vmul.f32 %v2321_v0, %v2679_v43 }
 0xfde   :  { %v1243_v14 = vsel %vm155_vm1, %v1242_v5, 0.0  ;;  %v1465_v5 = vstv %s1463_s25 }
 0xfdf   :  { %1244 = vadd.xlane.f32.xlu0 %v1243_v14 }
 0xff5   :  { %1488 = vrot.lane.b32.xlu0 %v2683_v47, %s2494_s10 }
0x1068   :  { %v1245_v18 = vpop.xlane.xlu0 %1244 }
0x1069   :  { %v1246_v20 = vadd.f32 %v2690_v50, %v1245_v18 }
0x106b   :  { %v2941_v23 = vmul.f32 %v1246_v20, %v2899_v32 }
0x106d   :  { %v1254_v55 = vadd.f32 %v2941_v23, %v2881_v17  ;;  %v1277_v17 = vmul.f32 %v2953_v33, %v2941_v23 }
0x106f   :  { %v1255_v59 = vmul.f32 0.5, %v1254_v55 }
0x1071   :  { %v1256_v31 = vmul.f32 %v1255_v59, %v2893_v13  ;;  %v1279_v13 = vstv %s1967_s24 }
0x1072   :  { %v1280_v30 = vmul.f32 %v1279_v13, %v2600_v7 }
0x1073   :  { %v2949_v2 = vadd.f32 %v1256_v31, %v1253_v8  ;;  %v3013_v8 = vpop.permute.xlu0 %1488 }
0x1074   :  { %v1290_v37 = vrot.slane %v1280_v30, %v2613_v11 }
0x1075   :  { %v1268_v21 = vmul.f32 2.0, %v2949_v2 }
0x1077   :  { %v1269_v34 = vsub.f32 %v1268_v21, %v2899_v32 }
0x1079   :  { %v1272_v35 = vadd.f32 %v1271_v56, %v1269_v34  ;;  %v3025_v34 = vld [vmem:[%s3124_s3] sm:$0x3]  ;;  %s2495_s3 = smov 122  }
0x107b   :  { %v2959_v36 = vadd.f32 %v1277_v17, %v1272_v35 }
0x107d   :  { %1283 = vperm.xlu1 %2270, %v2959_v36  }
0x10f8   :  { %v1284_v38 = vpop.permute.xlu1 %1283 }
0x10f9   :  { %v1286_v40 = vmul.f32 %v1284_v38, %v2610_v10 }
0x10fb   :  { %v1291_v41 = vadd.f32 %v1290_v37, %v1286_v40  ;;  %v3033_v37 = vld [vmem:[%s3125_s4] ss:$0 sm:$0xff]  ;;  %s2496_s4 = smov 1  }
0x10fd   :  { %v1292_v32 = vadd.f32 %v2623_v16, %v1291_v41 }
0x10ff   :  { %v1968_v42 = vmul.f32 -1.442695, %v1292_v32  ;;  %v1293_v46 = vmul.f32 0.909, %v1292_v32 }
0x1101   :  { %2322 = vpow2.f32 %v1968_v42 }
0x110e   :  { %v2323_v44 = vpop.eup %2322 }
0x110f   :  { %v1297_v45 = vadd.f32 1.0, %v2323_v44 }
0x1111   :  { %2324 = vrcp.f32 %v1297_v45 }
0x111e   :  { %v2325_v48 = vpop.eup %2324 }
0x111f   :  { %v1300_v49 = vmul.f32 %v2325_v48, %v1293_v46  ;;  %v2354_v46 = vld [vmem:[#allocation11 + $0x18] sm:$0xff]  ;;  %v2355_v48 = vld [vmem:[#allocation11 + $0x10] sm:$0xff] }
0x1121   :  { %2188 = vmatmul.mubr.msk.f32.vlgmr.msra.gmra.mxu0 %vm155_vm1, %v1300_v49  ;;  %v2356_v49 = vld [vmem:[#allocation11 + $0x8] sm:$0xff] }
0x1122   :  { %2202 = vmatpush3.msra.mxu0 %v2585_v1  ;;  %2209 = vmatprep.mubr.msk.f32.mxu0 %vm2484_vm0, %v2483_v3 }
0x1123   :  { %2203 = vmatprep.subr.mxu0 %v2483_v3 }
0x1124   :  { %2204 = vmatpush3.msra.mxu0 %v2588_v4 }
0x1125   :  { %2205 = vmatprep.subr.mxu0 %v2483_v3 }
0x1126   :  { %2206 = vmatpush3.msra.mxu0 %v2595_v6 }
0x1127   :  { %2207 = vmatprep.subr.mxu0 %v2483_v3 }
0x1128   :  { %2208 = vmatpush3.msra.mxu0 %v2606_v9 }
0x1129   :  { %2223 = vmatprep.subr.mxu0 %v2483_v3 }
0x11e1   :  { %v1370_v7 = vpop.f32.mrf.mxu0 }
0x11e2   :  { %v1371_v1 = vadd.f32 %v2656_v29, %v1370_v7  ;;  %v2357_v7 = vld [vmem:[#allocation11] sm:$0xff] }
0x11e3   :  { %v2189_v16 = vpop.f32.mrf.mxu0 }
0x11e4   :  { %v1970_v51 = vmul.f32 -1.442695, %v1371_v1  ;;  %v1374_v4 = vmul.f32 0.909, %v1371_v1 }
0x11e6   :  { %2326 = vpow2.f32 %v1970_v51 }
0x11f3   :  { %v2327_v52 = vpop.eup %2326 }
0x11f4   :  { %v1378_v53 = vadd.f32 1.0, %v2327_v52 }
0x11f6   :  { %2328 = vrcp.f32 %v1378_v53 }
0x1203   :  { %v2329_v54 = vpop.eup %2328 }
0x1204   :  { %v1381_v57 = vmul.f32 %v2329_v54, %v1374_v4 }
0x1206   :  { %2199 = vmatmul.mubr.msk.f32.vlgmr.msra.gmra.mxu1 %vm155_vm1, %v1381_v57 }
0x1207   :  { %2213 = vmatpush3.msra.mxu1 %v2637_v25  ;;  %2220 = vmatprep.mubr.msk.f32.mxu1 %vm2484_vm0, %v2483_v3 }
0x1208   :  { %2214 = vmatprep.subr.mxu1 %v2483_v3 }
0x1209   :  { %2215 = vmatpush3.msra.mxu1 %v2641_v26 }
0x120a   :  { %2216 = vmatprep.subr.mxu1 %v2483_v3 }
0x120b   :  { %2217 = vmatpush3.msra.mxu1 %v2645_v27  ;;  %v2994_v27 = vmul.f32 0.015625, %v2959_v36 }
0x120c   :  { %2218 = vmatprep.subr.mxu1 %v2483_v3 }
0x120d   :  { %2219 = vmatpush3.msra.mxu1 %v2649_v28  ;;  %v1464_v62 = vadd.f32 %v2994_v27, %v2934_v15  ;;  %v1484_v15 = vstv %s3003_s26 }
0x120e   :  { %2234 = vmatprep.subr.mxu1 %v2483_v3  ;;  %v1485_v31 = vmul.f32 %v1484_v15, %v2994_v27  ;;  %v1698_v15 = vstv %s3069_s15 }
0x120f   :  { %v1466_v18 = vmul.f32 %v1465_v5, %v1464_v62 }
0x1211   :  { %v1467_v22 = vadd.f32 %v1466_v18, %v2949_v2  ;;  %v1679_v18 = vstv %s1677_s13 }
0x12c6   :  { %v1451_v6 = vpop.f32.mrf.mxu1 }
0x12c7   :  { %v1452_v9 = vadd.f32 %v2673_v39, %v1451_v6 }
0x12c8   :  { %v2200_v25 = vpop.f32.mrf.mxu1 }
0x12c9   :  { %2330 = vtanh.f32 %v1452_v9  ;;  %v2358_v9 = vld [vmem:[#allocation13 + $0x18] sm:$0xff]  ;;  %v2359_v25 = vld [vmem:[#allocation13 + $0x10] sm:$0xff] }
0x12d6   :  { %v2331_v26 = vpop.eup %2330 }
0x12d7   :  { %v1456_v58 = vmul.f32 %v2331_v26, %v2679_v43  ;;  %v2361_v26 = vld [vmem:[#allocation13] sm:$0xff] }
0x12d9   :  { %v1457_v61 = vsel %vm155_vm1, %v1456_v58, 0.0 }
0x12da   :  { %1458 = vadd.xlane.f32.xlu1 %v1457_v61 }
0x12eb   :  { %1702 = vrot.lane.b32.xlu1 %v2683_v47, %s2495_s3 }
0x1363   :  { %v1459_v28 = vpop.xlane.xlu1 %1458 }
0x1364   :  { %v1460_v0 = vadd.f32 %v2690_v50, %v1459_v28 }
0x1366   :  { %v3001_v14 = vmul.f32 %v1460_v0, %v2959_v36 }
0x1368   :  { %v1468_v12 = vadd.f32 %v3001_v14, %v2941_v23  ;;  %v1491_v23 = vmul.f32 %v3013_v8, %v3001_v14 }
0x136a   :  { %v1469_v20 = vmul.f32 0.5, %v1468_v12 }
0x136c   :  { %v1470_v60 = vmul.f32 %v1469_v20, %v2953_v33  ;;  %v1493_v33 = vstv %s1973_s27 }
0x136d   :  { %v1494_v35 = vmul.f32 %v3025_v34, %v1493_v33 }
0x136e   :  { %v3009_v55 = vadd.f32 %v1470_v60, %v1467_v22 }
0x136f   :  { %v1504_v17 = vrot.slane %v1494_v35, %v2613_v11  ;;  %v1707_v35 = vstv %s1979_s16 }
0x1370   :  { %v1482_v59 = vmul.f32 2.0, %v3009_v55 }
0x1372   :  { %v1483_v63 = vsub.f32 %v1482_v59, %v2959_v36 }
0x1374   :  { %v1486_v21 = vadd.f32 %v1485_v31, %v1483_v63 }
0x1376   :  { %v3019_v56 = vadd.f32 %v1491_v23, %v1486_v21 }
0x1378   :  { %1497 = vperm.xlu0 %2271, %v3019_v56  }
0x13f3   :  { %v1498_v36 = vpop.permute.xlu0 %1497 }
0x13f4   :  { %v1500_v13 = vmul.f32 %v1498_v36, %v2610_v10 }
0x13f6   :  { %v1505_v30 = vadd.f32 %v1504_v17, %v1500_v13  ;;  %v1708_v17 = vmul.f32 %v3025_v34, %v1707_v35 }
0x13f8   :  { %v1506_v38 = vadd.f32 %v3033_v37, %v1505_v30  ;;  %v1718_v36 = vrot.slane %v1708_v17, %v2613_v11  ;;  %v2362_v11 = vld [vmem:[%s3127_s6] ss:$0 sm:$0xff] }
0x13fa   :  { %v1974_v40 = vmul.f32 -1.442695, %v1506_v38  ;;  %v1507_v42 = vmul.f32 0.909, %v1506_v38 }
0x13fc   :  { %2332 = vpow2.f32 %v1974_v40 }
0x1409   :  { %v2333_v41 = vpop.eup %2332 }
0x140a   :  { %v1511_v32 = vadd.f32 1.0, %v2333_v41 }
0x140c   :  { %2334 = vrcp.f32 %v1511_v32 }
0x1419   :  { %v2335_v44 = vpop.eup %2334 }
0x141a   :  { %v1514_v45 = vmul.f32 %v2335_v44, %v1507_v42 }
0x141c   :  { %2210 = vmatmul.mubr.msk.f32.vlgmr.msra.gmra.mxu0 %vm155_vm1, %v1514_v45 }
0x141d   :  { %2224 = vmatpush3.msra.mxu0 %v2354_v46  ;;  %2231 = vmatprep.mubr.msk.f32.mxu0 %vm2484_vm0, %v2483_v3 }
0x141e   :  { %2225 = vmatprep.subr.mxu0 %v2483_v3 }
0x141f   :  { %2226 = vmatpush3.msra.mxu0 %v2355_v48 }
0x1420   :  { %2227 = vmatprep.subr.mxu0 %v2483_v3 }
0x1421   :  { %2228 = vmatpush3.msra.mxu0 %v2356_v49 }
0x1422   :  { %2229 = vmatprep.subr.mxu0 %v2483_v3 }
0x1423   :  { %2230 = vmatpush3.msra.mxu0 %v2357_v7 }
0x14dc   :  { %v1584_v1 = vpop.f32.mrf.mxu0 }
0x14dd   :  { %v1585_v16 = vadd.f32 %v2656_v29, %v1584_v1  ;;  %v2360_v29 = vld [vmem:[#allocation13 + $0x8] sm:$0xff] }
0x14de   :  { %v2211_v51 = vpop.f32.mrf.mxu0 }
0x14df   :  { %v1976_v52 = vmul.f32 -1.442695, %v1585_v16  ;;  %v1588_v54 = vmul.f32 0.909, %v1585_v16 }
0x14e1   :  { %2336 = vpow2.f32 %v1976_v52  ;;  %v2363_v52 = vld [vmem:[%s3129_s8] ss:$0 sm:$0xff]  ;;  %s2499_s8 = smov 6  }
0x14ee   :  { %v2337_v53 = vpop.eup %2336 }
0x14ef   :  { %v1592_v4 = vadd.f32 1.0, %v2337_v53 }
0x14f1   :  { %2338 = vrcp.f32 %v1592_v4 }
0x14fe   :  { %v2339_v57 = vpop.eup %2338 }
0x14ff   :  { %v1595_v6 = vmul.f32 %v2339_v57, %v1588_v54  ;;  %v2364_v57 = vld [vmem:[%s3130_s9] ss:$0 sm:$0xff]  ;;  %s2500_s9 = smov [#allocation14]  }
0x1500   :  { %s1927_s21 = sshll.u32 %s2500_s9, 4  ;;  %s1928_s21 = int_to_ptr.vmem [resolvable:$true] %s1927_s21 }
0x1501   :  { %2221 = vmatmul.mubr.msk.f32.vlgmr.msra.gmra.mxu1 %vm155_vm1, %v1595_v6  ;;  %p2451_p7 = scmp.lt.s32.totalorder %s1928_s21, %s1928_s21 }
0x1502   :  { %2235 = vmatpush3.msra.mxu1 %v2358_v9  ;;  %2242 = vmatprep.mubr.msk.f32.mxu1 %vm2484_vm0, %v2483_v3 }
0x1503   :  { %2236 = vmatprep.subr.mxu1 %v2483_v3 }
0x1504   :  { %2237 = vmatpush3.msra.mxu1 %v2359_v25 }
0x1505   :  { %2238 = vmatprep.subr.mxu1 %v2483_v3 }
0x1506   :  { %2239 = vmatpush3.msra.mxu1 %v2360_v29 }
0x1507   :  { %2240 = vmatprep.subr.mxu1 %v2483_v3  ;;  %v3060_v3 = vmul.f32 0.015625, %v3019_v56 }
0x1508   :  { %2241 = vmatpush3.msra.mxu1 %v2361_v26  ;;  %v2365_v26 = vld [vmem:[#allocation3] ss:$0 sm:$0xff] }
0x1509   :  { %v1699_v63 = vmul.f32 %v1698_v15, %v3060_v3 }
0x15c1   :  { %v1665_v58 = vpop.f32.mrf.mxu1 }
0x15c2   :  { %v1666_v61 = vadd.f32 %v2673_v39, %v1665_v58 }
0x15c3   :  { %v2222_v28 = vpop.f32.mrf.mxu1 }
0x15c4   :  { %2340 = vtanh.f32 %v1666_v61  ;;  %v1893_v28 = vstv %s1891_s7 }
0x15d1   :  { %v2341_v62 = vpop.eup %2340 }
0x15d2   :  { %v1670_v0 = vmul.f32 %v2341_v62, %v2679_v43  ;;  %v1678_v43 = vadd.f32 %v3060_v3, %v2994_v27 }
0x15d4   :  { %v1671_v5 = vsel %vm155_vm1, %v1670_v0, 0.0 }
0x15d5   :  { %1672 = vadd.xlane.f32.xlu0 %v1671_v5 }
0x15eb   :  { %831 = vrot.lane.b32.xlu0 %v2830_v19, %s2496_s4 }
0x15ef   :  { %1045 = vrot.lane.b32.xlu0 %v2889_v24, %s2492_s14  ;;  %v1680_v24 = vmul.f32 %v1679_v18, %v1678_v43 }
0x15f1   :  { %v1681_v27 = vadd.f32 %v1680_v24, %v3009_v55 }
0x15f3   :  { %1259 = vrot.lane.b32.xlu0 %v2949_v2, %s2485_s0 }
0x165e   :  { %v1673_v39 = vpop.xlane.xlu0 %1672 }
0x165f   :  { %v1674_v47 = vadd.f32 %v2690_v50, %v1673_v39 }
0x1661   :  { %v3067_v12 = vmul.f32 %v1674_v47, %v3019_v56 }
0x1662   :  { %v832_v19 = vpop.permute.xlu0 %831 }
0x1663   :  { %v1682_v2 = vadd.f32 %v3067_v12, %v3001_v14  ;;  %835 = vst.msk [vmem:[#allocation14] sm:$0xff] %vm337_vm3, %v832_v19  ;;  %v3083_v14 = vpop.permute.xlu1 %1702 }
0x1664   :  { %v1705_v23 = vmul.f32 %v3083_v14, %v3067_v12 }
0x1665   :  { %v1683_v20 = vmul.f32 0.5, %v1682_v2 }
0x1666   :  { %v1046_v22 = vpop.permute.xlu0 %1045 }
0x1667   :  { %v1684_v50 = vmul.f32 %v1683_v20, %v3013_v8  ;;  %1049 = vst.msk [vmem:[#allocation14] sm:$0xff] %vm339_vm4, %v1046_v22 }
0x1669   :  { %v3077_v60 = vadd.f32 %v1684_v50, %v1681_v27 }
0x166a   :  { %v1260_v59 = vpop.permute.xlu0 %1259 }
0x166b   :  { %v1696_v31 = vmul.f32 2.0, %v3077_v60  ;;  %1263 = vst.msk [vmem:[#allocation14] sm:$0xff] %vm345_vm5, %v1260_v59  ;;  %1687 = vrot.lane.b32.xlu0 %v3077_v60, %s2497_s5 }
0x166d   :  { %v1697_v21 = vsub.f32 %v1696_v31, %v3019_v56 }
0x166f   :  { %v1700_v8 = vadd.f32 %v1699_v63, %v1697_v21 }
0x1671   :  { %v1706_v33 = vadd.f32 %v1705_v23, %v1700_v8 }
0x1673   :  { %1907 = vrot.lane.b32.xlu0 %v1706_v33, %s2496_s4  ;;  %1711 = vperm.xlu1 %2270, %v1706_v33   ;;  %v1889_v25 = vmul.f32 0.015625, %v1706_v33 }
0x1675   :  { %v1892_v61 = vadd.f32 %v1889_v25, %v3060_v3 }
0x1677   :  { %v1894_v43 = vmul.f32 %v1893_v28, %v1892_v61 }
0x1679   :  { %v1895_v47 = vadd.f32 %v1894_v43, %v3077_v60 }
0x16dd   :  { %v1688_v5 = vpop.permute.xlu0 %1687 }
0x16e5   :  { %v1908_v3 = vpop.permute.xlu0 %1907 }
0x16ee   :  { %v1712_v13 = vpop.permute.xlu1 %1711 }
0x16ef   :  { %v1714_v30 = vmul.f32 %v1712_v13, %v2610_v10 }
0x16f1   :  { %v1719_v38 = vadd.f32 %v1718_v36, %v1714_v30 }
0x16f3   :  { %v1720_v56 = vadd.f32 %v3033_v37, %v1719_v38 }
0x16f5   :  { %v1980_v40 = vmul.f32 -1.442695, %v1720_v56  ;;  %v1721_v42 = vmul.f32 0.909, %v1720_v56 }
0x16f7   :  { %2342 = vpow2.f32 %v1980_v40 }
0x1704   :  { %v2343_v41 = vpop.eup %2342 }
0x1705   :  { %v1725_v32 = vadd.f32 1.0, %v2343_v41 }
0x1707   :  { %2344 = vrcp.f32 %v1725_v32 }
0x1714   :  { %v2345_v44 = vpop.eup %2344 }
0x1715   :  { %v1728_v45 = vmul.f32 %v2345_v44, %v1721_v42 }
0x1717   :  { %2232 = vmatmul.mubr.msk.f32.vlgmr.msra.gmra.mxu0 %vm155_vm1, %v1728_v45 }
0x17d7   :  { %v1798_v46 = vpop.f32.mrf.mxu0 }
0x17d8   :  { %v1799_v34 = vadd.f32 %v2362_v11, %v1798_v46 }
0x17d9   :  { %v2233_v10 = vpop.f32.mrf.mxu0 }
0x17da   :  { %v1982_v48 = vmul.f32 -1.442695, %v1799_v34  ;;  %v1802_v7 = vmul.f32 0.909, %v1799_v34 }
0x17dc   :  { %2346 = vpow2.f32 %v1982_v48 }
0x17e9   :  { %v2347_v37 = vpop.eup %2346 }
0x17ea   :  { %v1806_v49 = vadd.f32 1.0, %v2347_v37 }
0x17ec   :  { %2348 = vrcp.f32 %v1806_v49 }
0x17f9   :  { %v2349_v1 = vpop.eup %2348 }
0x17fa   :  { %v1809_v16 = vmul.f32 %v2349_v1, %v1802_v7 }
0x17fc   :  { %2243 = vmatmul.mubr.msk.f32.vlgmr.msra.gmra.mxu1 %vm155_vm1, %v1809_v16 }
0x18bc   :  { %v1879_v51 = vpop.f32.mrf.mxu1 }
0x18bd   :  { %v1880_v53 = vadd.f32 %v2363_v52, %v1879_v51 }
0x18be   :  { %v2244_v4 = vpop.f32.mrf.mxu1 }
0x18bf   :  { %2350 = vtanh.f32 %v1880_v53 }
0x18cc   :  { %v2351_v54 = vpop.eup %2350 }
0x18cd   :  { %v1884_v6 = vmul.f32 %v2364_v57, %v2351_v54 }
0x18cf   :  { %v1885_v9 = vsel %vm155_vm1, %v1884_v6, 0.0 }
0x18d0   :  { %1886 = vadd.xlane.f32.xlu1 %v1885_v9 }
0x18e1   :  { %1473 = vrot.lane.b32.xlu1 %v3009_v55, %s2498_s2 }
0x1959   :  { %v1887_v29 = vpop.xlane.xlu1 %1886 }
0x195a   :  { %v1888_v58 = vadd.f32 %v2365_v26, %v1887_v29 }
0x195c   :  { %v1890_v62 = vmul.f32 %v1888_v58, %v1706_v33 }
0x195d   :  { %v1474_v0 = vpop.permute.xlu1 %1473 }
0x195e   :  { %v1896_v39 = vadd.f32 %v1890_v62, %v3067_v12  ;;  %1477 = vst.msk [vmem:[#allocation14] sm:$0xff] %vm1476_vm6, %v1474_v0  ;;  %1917 = vrot.lane.b32.xlu1 %v1890_v62, %s2485_s0  ;;  %s2446_s0 = scalar_lea.vmem %s1928_s21, 128 }
0x195f   :  { %1691 = vst.msk [vmem:[#allocation14] sm:$0xff] %vm1690_vm7, %v1688_v5  ;;  %p2447_p6 = scmp.ne.s32.totalorder %s1928_s21, %s2446_s0  ;;  %p2452_p8 = scmp.lt.s32.totalorder %s2446_s0, %s2446_s0 }
0x1960   :  { %v1897_v55 = vmul.f32 0.5, %v1896_v39 }
0x1961   :  { %p2453_p9 = por %p2452_p8, %p2451_p7 }
0x1962   :  { %v1898_v18 = vmul.f32 %v1897_v55, %v3083_v14 }
0x1963   :  { %p2454_p10 = pnand %p2453_p9, %p2447_p6 }
0x1964   :  { %v1899_v19 = vadd.f32 %v1898_v18, %v1895_v47 }
0x1966   :  { %1901 = vrot.lane.b32.xlu0 %v1899_v19, %s2499_s8  ;;  %1906 = vst.msk [vmem:[#allocation2] sm:$0xff] %vm335_vm2, %v1899_v19 }
0x1967   :  { %1910 = vst.msk [vmem:[#allocation2] sm:$0xff] %vm337_vm3, %v1908_v3 }
0x196a   :  { %1912 = vrot.lane.b32.xlu0 %v1889_v25, %s2492_s14 }
0x19d8   :  { %v1902_v12 = vpop.permute.xlu0 %1901 }
0x19d9   :  { %1905 = vst.msk [vmem:[#allocation14] sm:$0xff] %vm1904_vm8, %v1902_v12 }
0x19da   :  { %2457 = shalt.err (!%p2454_p10)
}
0x19db   :  { %1930 = dma.vmem_to_hbm [thread:$0]  %s1928_s21, 128, %s3132_s11, [#allocation6]   ;;  %v1918_v2 = vpop.permute.xlu1 %1917 }
0x19dc   :  { %v1913_v24 = vpop.permute.xlu0 %1912 }
0x19dd   :  { %1915 = vst.msk [vmem:[#allocation2] sm:$0xff] %vm339_vm4, %v1913_v24 }
0x19de   :  { %1920 = vst.msk [vmem:[#allocation2] sm:$0xff] %vm345_vm5, %v1918_v2 }
0x19df   :  { %2474 = dma.done.wait [#allocation6], 128  }
0x19e0   :  { %2475 = vsyncadd [#allocation6], 4294967168 }
0x19e1   :  { %1934 = vsyncpa [#allocation5], 1 }
0x19e2   :  { %1935 = vsyncpa [#allocation12], 1 }
0x19e3   :  { %1936 = vsyncpa [#allocation6], 1 }
0x19e4   :  { %1937 = vsyncpa [#allocation7], 1 }
0x19e5   :  { %1938 = vsyncpa [#allocation8], 1 }

</bundles_post_ra>
